<compile_context>
chip_gen: v6e
topology: v6e:2x2x1
jax: 0.10.0
libtpu: 0.0.40
codegen_flags: <defaults>
</compile_context>

<pallas_src>
import functools

import jax
import jax.numpy as jnp
from jax import lax
from jax.experimental import pallas as pl
from jax.experimental.pallas import tpu as pltpu


# ------------------------------ Pallas kernel -------------------------------

def _decoder_kernel(z_ref,
                    m1_ref, g1_ref, g1t_ref, gb1_ref,
                    m2_ref, g2_ref, g2t_ref, gb2_ref,
                    m3_ref, b3_ref,
                    o_ref):
    eps = 1e-5
    bf16 = jnp.bfloat16

    def bn_lrelu(y, g_ref, gt_ref, gb_ref):
        # y: (B, C*S) f32, lanes grouped channel-major (lane j -> channel j // S)
        # g_ref : (C*S, C) 0/1 pooling matrix pre-scaled by 1/S (host-side)
        # gt_ref: (C, C*S) 0/1 broadcast matrix
        # gb_ref: (2, C)   row 0 = gamma, row 1 = beta
        inv_b = 1.0 / y.shape[0]
        # ONE pooling matmul for both E[y] and E[y^2] (rows stacked on sublanes)
        col = jnp.concatenate([jnp.sum(y, axis=0, keepdims=True),
                               jnp.sum(y * y, axis=0, keepdims=True)], axis=0)
        stats = jnp.dot(col, g_ref[...],
                        preferred_element_type=jnp.float32) * inv_b     # (2, C)
        mean_c = stats[0:1, :]
        var_c = jnp.maximum(stats[1:2, :] - mean_c * mean_c, 0.0)       # biased var
        scale_c = lax.rsqrt(var_c + eps) * gb_ref[0:1, :]               # gamma folded
        shift_c = gb_ref[1:2, :] - mean_c * scale_c
        # ONE broadcast matmul returns both scale and shift at lane width
        coef = jnp.dot(jnp.concatenate([scale_c, shift_c], axis=0),
                       gt_ref[...], preferred_element_type=jnp.float32)  # (2, C*S)
        yn = y * coef[0:1, :] + coef[1:2, :]
        return jnp.maximum(yn, 0.2 * yn)                                 # LeakyReLU(0.2)

    # layer 1: ConvTranspose2d(Z, 2nf, 3, 1, 0) + BN + LeakyReLU
    y1 = jnp.dot(z_ref[...].astype(bf16), m1_ref[...],
                 preferred_element_type=jnp.float32)                     # (B, 2nf*9)
    f1 = bn_lrelu(y1, g1_ref, g1t_ref, gb1_ref)
    # layer 2: ConvTranspose2d(2nf, nf, 4, 3, 1) + BN + LeakyReLU
    y2 = jnp.dot(f1.astype(bf16), m2_ref[...],
                 preferred_element_type=jnp.float32)                     # (B, nf*64)
    f2 = bn_lrelu(y2, g2_ref, g2t_ref, gb2_ref)
    # layer 3: ConvTranspose2d(nf, C, 6, 4, 3) + bias + Tanh
    y3 = jnp.dot(f2.astype(bf16), m3_ref[...],
                 preferred_element_type=jnp.float32)                     # (B, C*784)
    o_ref[...] = jnp.tanh(y3 + b3_ref[...])


def _full_spec(shape):
    return pl.BlockSpec(shape, lambda i: (0,) * len(shape))


# --------------------------- host-side lowering ------------------------------

def _densify_convT(w, H, W, stride, pad):
    """Lower ConvTranspose2d (weight (Cin,Cout,K,K), stride, pad) on an (H, W)
    input into a dense matrix (Cin*H*W, Cout*OH*OW).  Exact; used instead of
    im2col because the decoder's spatial extents are tiny (1 -> 3 -> 8 -> 28)."""
    Cin, Cout, K, _ = w.shape
    OH = (H - 1) * stride - 2 * pad + K
    OW = (W - 1) * stride - 2 * pad + K
    kh = jnp.arange(OH)[None, :] + pad - jnp.arange(H)[:, None] * stride   # (H, OH)
    kw = jnp.arange(OW)[None, :] + pad - jnp.arange(W)[:, None] * stride   # (W, OW)
    vh = (kh >= 0) & (kh < K)
    vw = (kw >= 0) & (kw < K)
    wg = w[:, :, jnp.clip(kh, 0, K - 1), :]          # (Cin, Cout, H, OH, K)
    wg = wg[:, :, :, :, jnp.clip(kw, 0, K - 1)]      # (Cin, Cout, H, OH, W, OW)
    mask = vh[None, None, :, :, None, None] & vw[None, None, None, None, :, :]
    m = jnp.where(mask, wg, 0.0)
    m = m.transpose(0, 2, 4, 1, 3, 5)                # (Cin, H, W, Cout, OH, OW)
    return m.reshape(Cin * H * W, Cout * OH * OW), (OH, OW)


def _group_matrix(n_ch, spatial):
    """(C*S, C) 0/1 matrix: column c selects the lanes of channel c."""
    idx = jnp.arange(n_ch * spatial) // spatial
    return (idx[:, None] == jnp.arange(n_ch)[None, :]).astype(jnp.float32)


def prepare_decoder_params(params, latent_hw=(1, 1)):
    """One-time lowering of the module parameters into kernel operands.
    Call once (and again only when params change); reuse across forwards."""
    H, W = latent_hw
    w1, w2, w3 = params["layer1"]["w"], params["layer2"]["w"], params["layer3"]["w"]
    c3 = w3.shape[1]

    m1, (oh1, ow1) = _densify_convT(w1, H, W, stride=1, pad=0)
    m2, (oh2, ow2) = _densify_convT(w2, oh1, ow1, stride=3, pad=1)
    m3, (oh3, ow3) = _densify_convT(w3, oh2, ow2, stride=4, pad=3)
    s1, s2, s3 = oh1 * ow1, oh2 * ow2, oh3 * ow3
    c1, c2 = w1.shape[1], w2.shape[1]

    # bf16 dense weights for the MXU (accumulation stays f32 in-kernel)
    m1, m2, m3 = (m.astype(jnp.bfloat16) for m in (m1, m2, m3))

    g1 = _group_matrix(c1, s1)
    g2 = _group_matrix(c2, s2)
    gb1 = jnp.stack([params["layer1"]["gamma"], params["layer1"]["beta"]])  # (2, C1)
    gb2 = jnp.stack([params["layer2"]["gamma"], params["layer2"]["beta"]])  # (2, C2)
    b3 = jnp.repeat(params["layer3"]["b"], s3)[None, :]
    # NOTE: layer1/layer2 ConvTranspose biases are intentionally omitted: a
    # per-channel constant added before training-mode BatchNorm is exactly
    # cancelled by the mean subtraction (variance unchanged).

    ops = (m1, g1 * (1.0 / s1), g1.T, gb1,
           m2, g2 * (1.0 / s2), g2.T, gb2,
           m3, b3)
    meta = (c3, oh3, ow3)
    return jax.tree_util.tree_map(jnp.asarray, ops), meta


# ------------------------------ decoder fwd ----------------------------------

@functools.partial(jax.jit, static_argnums=(2,))
def decoder_forward(prepared_ops, z, out_meta):
    c3, oh3, ow3 = out_meta
    N = z.shape[0]
    z2d = z.reshape(N, -1)
    operands = (z2d,) + tuple(prepared_ops)
    out_cols = c3 * oh3 * ow3

    m1, m2, m3 = prepared_ops[0], prepared_ops[4], prepared_ops[8]
    gb1, gb2 = prepared_ops[3], prepared_ops[7]
    flops = 2 * N * (z2d.shape[1] * m1.shape[1]
                     + m1.shape[1] * m2.shape[1]
                     + m2.shape[1] * m3.shape[1])
    bytes_accessed = int(sum(int(x.size) * x.dtype.itemsize for x in operands)
                         + N * out_cols * 4)
    transcendentals = int(N * out_cols + gb1.shape[1] + gb2.shape[1])

    out = pl.pallas_call(
        _decoder_kernel,
        out_shape=jax.ShapeDtypeStruct((N, out_cols), jnp.float32),
        grid=(1,),
        in_specs=[_full_spec(x.shape) for x in operands],
        out_specs=_full_spec((N, out_cols)),
        compiler_params=pltpu.CompilerParams(dimension_semantics=("arbitrary",)),
        cost_estimate=pl.CostEstimate(flops=flops,
                                      transcendentals=transcendentals,
                                      bytes_accessed=bytes_accessed),
    )(*operands)
    # output columns are already (Cout, OH, OW)-ordered -> direct NCHW reshape
    return out.reshape(N, c3, oh3, ow3)


# ---------------------------- parameter init ---------------------------------

def _xavier_normal_convT(key, cin, cout, K):
    # torch.nn.init.xavier_normal for weight of shape (Cin, Cout, K, K)
    std = (2.0 / ((cin + cout) * K * K)) ** 0.5
    return std * jax.random.normal(key, (cin, cout, K, K), jnp.float32)


def init_decoder_params(key, num_in_channels=1, z_size=32, num_filters=8):
    ks = jax.random.split(key, 8)
    nf = num_filters
    return {
        "layer1": {
            "w": _xavier_normal_convT(ks[0], z_size, 2 * nf, 3),
            "b": 0.01 * jax.random.normal(ks[1], (2 * nf,), jnp.float32),
            "gamma": 1.0 + 0.02 * jax.random.normal(ks[2], (2 * nf,), jnp.float32),
            "beta": jnp.zeros((2 * nf,), jnp.float32),
        },
        "layer2": {
            "w": _xavier_normal_convT(ks[3], 2 * nf, nf, 4),
            "b": 0.01 * jax.random.normal(ks[4], (nf,), jnp.float32),
            "gamma": 1.0 + 0.02 * jax.random.normal(ks[5], (nf,), jnp.float32),
            "beta": jnp.zeros((nf,), jnp.float32),
        },
        "layer3": {
            "w": _xavier_normal_convT(ks[6], nf, num_in_channels, 6),
            "b": 0.01 * jax.random.normal(ks[7], (num_in_channels,), jnp.float32),
        },
    }


# --------------------- pure-JAX reference (sanity check) ---------------------

def _convT_ref(x, w, b, stride, pad):
    K = w.shape[2]
    w_conv = jnp.flip(w, (2, 3)).transpose(1, 0, 2, 3)      # (Cout, Cin, K, K)
    y = lax.conv_general_dilated(
        x, w_conv, window_strides=(1, 1),
        padding=[(K - 1 - pad, K - 1 - pad)] * 2,
        lhs_dilation=(stride, stride),
        dimension_numbers=("NCHW", "OIHW", "NCHW"))
    return y + b.reshape(1, -1, 1, 1)


def _decoder_ref(params, z):
    eps = 1e-5

    def bn_lrelu(y, gamma, beta):
        mean = y.mean(axis=(0, 2, 3), keepdims=True)
        var = ((y - mean) ** 2).mean(axis=(0, 2, 3), keepdims=True)
        yn = (y - mean) * lax.rsqrt(var + eps)
        yn = yn * gamma.reshape(1, -1, 1, 1) + beta.reshape(1, -1, 1, 1)
        return jnp.where(yn > 0, yn, 0.2 * yn)

    p1, p2, p3 = params["layer1"], params["layer2"], params["layer3"]
    f1 = bn_lrelu(_convT_ref(z, p1["w"], p1["b"], 1, 0), p1["gamma"], p1["beta"])
    f2 = bn_lrelu(_convT_ref(f1, p2["w"], p2["b"], 3, 1), p2["gamma"], p2["beta"])
    return jnp.tanh(_convT_ref(f2, p3["w"], p3["b"], 4, 3))


# ---------------------------------- main --------------------------------------

if __name__ == "__main__":
    key = jax.random.PRNGKey(0)
    k_param, k_z = jax.random.split(key)

    # batch=2, z_size=32, num_filters=8, 1x1 latent spatial map (NCHW like PyTorch)
    B, Z, NF, CIN = 2, 32, 8, 1
    params = init_decoder_params(k_param, num_in_channels=CIN, z_size=Z, num_filters=NF)
    z = jax.random.normal(k_z, (B, Z, 1, 1), jnp.float32)

    # one-time weight lowering (hoisted out of the forward path)
    prepared_ops, out_meta = prepare_decoder_params(params, latent_hw=(1, 1))
    prepared_ops = jax.block_until_ready(prepared_ops)

    out = decoder_forward(prepared_ops, z, out_meta)
    out = jax.block_until_ready(out)

    expected = (B, CIN, 28, 28)          # 1 -> 3 -> 8 -> 28 spatial upsampling
    assert out.shape == expected, (out.shape, expected)
    assert bool(jnp.all(jnp.isfinite(out)))

    # sanity-check against a pure-XLA reference (loose tol: bf16 MXU inputs)
    ref = _decoder_ref(params, z)
    max_err = float(jnp.max(jnp.abs(out - ref)))
    assert max_err < 0.1, max_err

    print("KERNEL_OK")
</pallas_src>

<mosaic_0001>
module attributes {stable_mosaic.version = 11 : i64} {
  func.func @_decoder_kernel(%arg0: i32, %arg1: memref<2x32xf32, #tpu.memory_space<vmem>>, %arg2: memref<32x144xbf16, #tpu.memory_space<vmem>>, %arg3: memref<144x16xf32, #tpu.memory_space<vmem>>, %arg4: memref<16x144xf32, #tpu.memory_space<vmem>>, %arg5: memref<2x16xf32, #tpu.memory_space<vmem>>, %arg6: memref<144x512xbf16, #tpu.memory_space<vmem>>, %arg7: memref<512x8xf32, #tpu.memory_space<vmem>>, %arg8: memref<8x512xf32, #tpu.memory_space<vmem>>, %arg9: memref<2x8xf32, #tpu.memory_space<vmem>>, %arg10: memref<512x784xbf16, #tpu.memory_space<vmem>>, %arg11: memref<1x784xf32, #tpu.memory_space<vmem>>, %arg12: memref<2x784xf32, #tpu.memory_space<vmem>>) attributes {dimension_semantics = [#tpu.dimension_semantics<arbitrary>], iteration_bounds = array<i64: 1>, scalar_prefetch = 0 : i64, scratch_operands = 0 : i64, tpu.core_type = #tpu.core_type<tc>, window_params = [{pipeline_mode = #tpu.pipeline_mode<synchronous>, transform_indices = @transform_0, window_bounds = array<i64: 2, 32>}, {pipeline_mode = #tpu.pipeline_mode<synchronous>, transform_indices = @transform_1, window_bounds = array<i64: 32, 144>}, {pipeline_mode = #tpu.pipeline_mode<synchronous>, transform_indices = @transform_2, window_bounds = array<i64: 144, 16>}, {pipeline_mode = #tpu.pipeline_mode<synchronous>, transform_indices = @transform_3, window_bounds = array<i64: 16, 144>}, {pipeline_mode = #tpu.pipeline_mode<synchronous>, transform_indices = @transform_4, window_bounds = array<i64: 2, 16>}, {pipeline_mode = #tpu.pipeline_mode<synchronous>, transform_indices = @transform_5, window_bounds = array<i64: 144, 512>}, {pipeline_mode = #tpu.pipeline_mode<synchronous>, transform_indices = @transform_6, window_bounds = array<i64: 512, 8>}, {pipeline_mode = #tpu.pipeline_mode<synchronous>, transform_indices = @transform_7, window_bounds = array<i64: 8, 512>}, {pipeline_mode = #tpu.pipeline_mode<synchronous>, transform_indices = @transform_8, window_bounds = array<i64: 2, 8>}, {pipeline_mode = #tpu.pipeline_mode<synchronous>, transform_indices = @transform_9, window_bounds = array<i64: 512, 784>}, {pipeline_mode = #tpu.pipeline_mode<synchronous>, transform_indices = @transform_10, window_bounds = array<i64: 1, 784>}, {pipeline_mode = #tpu.pipeline_mode<synchronous>, transform_indices = @transform_11, window_bounds = array<i64: 2, 784>}]} {
    %c0 = arith.constant 0 : index
    %c0_0 = arith.constant 0 : index
    %0 = vector.load %arg1[%c0, %c0_0] : memref<2x32xf32, #tpu.memory_space<vmem>>, vector<2x32xf32>
    %1 = arith.truncf %0 : vector<2x32xf32> to vector<2x32xbf16>
    %c0_1 = arith.constant 0 : index
    %c0_2 = arith.constant 0 : index
    %2 = vector.load %arg2[%c0_1, %c0_2] : memref<32x144xbf16, #tpu.memory_space<vmem>>, vector<32x144xbf16>
    %cst = arith.constant dense<0.000000e+00> : vector<2x144xf32>
    %3 = tpu.matmul %1, %2, %cst {dimension_numbers = #tpu.dot_dimension_numbers<[1], [0], [0], [1], [0, 0, 1, 1], [], []>} : vector<2x32xbf16>, vector<32x144xbf16>, vector<2x144xf32> -> vector<2x144xf32>
    %cst_3 = arith.constant dense<0.000000e+00> : vector<144xf32>
    %4 = vector.multi_reduction <add>, %3, %cst_3 [0] : vector<2x144xf32> to vector<144xf32>
    %5 = vector.shape_cast %4 : vector<144xf32> to vector<1x144xf32>
    %6 = arith.mulf %3, %3 : vector<2x144xf32>
    %cst_4 = arith.constant dense<0.000000e+00> : vector<144xf32>
    %7 = vector.multi_reduction <add>, %6, %cst_4 [0] : vector<2x144xf32> to vector<144xf32>
    %8 = vector.shape_cast %7 : vector<144xf32> to vector<1x144xf32>
    %9 = tpu.concatenate %5, %8 in 0 : vector<1x144xf32>, vector<1x144xf32> -> vector<2x144xf32>
    %c0_5 = arith.constant 0 : index
    %c0_6 = arith.constant 0 : index
    %10 = vector.load %arg3[%c0_5, %c0_6] : memref<144x16xf32, #tpu.memory_space<vmem>>, vector<144x16xf32>
    %cst_7 = arith.constant dense<0.000000e+00> : vector<2x16xf32>
    %11 = tpu.matmul %9, %10, %cst_7 {dimension_numbers = #tpu.dot_dimension_numbers<[1], [0], [0], [1], [0, 0, 1, 1], [], []>} : vector<2x144xf32>, vector<144x16xf32>, vector<2x16xf32> -> vector<2x16xf32>
    %cst_8 = arith.constant 5.000000e-01 : f32
    %12 = vector.broadcast %cst_8 : f32 to vector<2x16xf32>
    %13 = arith.mulf %11, %12 : vector<2x16xf32>
    %14 = vector.extract_strided_slice %13 {offsets = [0, 0], sizes = [1, 16], strides = [1, 1]} : vector<2x16xf32> to vector<1x16xf32>
    %15 = vector.extract_strided_slice %13 {offsets = [1, 0], sizes = [1, 16], strides = [1, 1]} : vector<2x16xf32> to vector<1x16xf32>
    %16 = arith.mulf %14, %14 : vector<1x16xf32>
    %17 = arith.subf %15, %16 : vector<1x16xf32>
    %cst_9 = arith.constant 0.000000e+00 : f32
    %18 = vector.broadcast %cst_9 : f32 to vector<1x16xf32>
    %19 = arith.maximumf %17, %18 : vector<1x16xf32>
    %cst_10 = arith.constant 9.99999974E-6 : f32
    %20 = vector.broadcast %cst_10 : f32 to vector<1x16xf32>
    %21 = arith.addf %19, %20 : vector<1x16xf32>
    %22 = math.rsqrt %21 : vector<1x16xf32>
    %c0_11 = arith.constant 0 : index
    %c0_12 = arith.constant 0 : index
    %23 = vector.load %arg5[%c0_11, %c0_12] : memref<2x16xf32, #tpu.memory_space<vmem>>, vector<1x16xf32>
    %24 = arith.mulf %22, %23 : vector<1x16xf32>
    %c1 = arith.constant 1 : index
    %c0_13 = arith.constant 0 : index
    %25 = vector.load %arg5[%c1, %c0_13] : memref<2x16xf32, #tpu.memory_space<vmem>>, vector<1x16xf32>
    %26 = arith.mulf %14, %24 : vector<1x16xf32>
    %27 = arith.subf %25, %26 : vector<1x16xf32>
    %28 = tpu.concatenate %24, %27 in 0 : vector<1x16xf32>, vector<1x16xf32> -> vector<2x16xf32>
    %c0_14 = arith.constant 0 : index
    %c0_15 = arith.constant 0 : index
    %29 = vector.load %arg4[%c0_14, %c0_15] : memref<16x144xf32, #tpu.memory_space<vmem>>, vector<16x144xf32>
    %cst_16 = arith.constant dense<0.000000e+00> : vector<2x144xf32>
    %30 = tpu.matmul %28, %29, %cst_16 {dimension_numbers = #tpu.dot_dimension_numbers<[1], [0], [0], [1], [0, 0, 1, 1], [], []>} : vector<2x16xf32>, vector<16x144xf32>, vector<2x144xf32> -> vector<2x144xf32>
    %31 = vector.extract_strided_slice %30 {offsets = [0, 0], sizes = [1, 144], strides = [1, 1]} : vector<2x144xf32> to vector<1x144xf32>
    %32 = vector.broadcast %31 : vector<1x144xf32> to vector<2x144xf32>
    %33 = arith.mulf %3, %32 : vector<2x144xf32>
    %34 = vector.extract_strided_slice %30 {offsets = [1, 0], sizes = [1, 144], strides = [1, 1]} : vector<2x144xf32> to vector<1x144xf32>
    %35 = vector.broadcast %34 : vector<1x144xf32> to vector<2x144xf32>
    %36 = arith.addf %33, %35 : vector<2x144xf32>
    %cst_17 = arith.constant 2.000000e-01 : f32
    %37 = vector.broadcast %cst_17 : f32 to vector<2x144xf32>
    %38 = arith.mulf %37, %36 : vector<2x144xf32>
    %39 = arith.maximumf %36, %38 : vector<2x144xf32>
    %40 = arith.truncf %39 : vector<2x144xf32> to vector<2x144xbf16>
    %c0_18 = arith.constant 0 : index
    %c0_19 = arith.constant 0 : index
    %41 = vector.load %arg6[%c0_18, %c0_19] : memref<144x512xbf16, #tpu.memory_space<vmem>>, vector<144x512xbf16>
    %cst_20 = arith.constant dense<0.000000e+00> : vector<2x512xf32>
    %42 = tpu.matmul %40, %41, %cst_20 {dimension_numbers = #tpu.dot_dimension_numbers<[1], [0], [0], [1], [0, 0, 1, 1], [], []>} : vector<2x144xbf16>, vector<144x512xbf16>, vector<2x512xf32> -> vector<2x512xf32>
    %cst_21 = arith.constant dense<0.000000e+00> : vector<512xf32>
    %43 = vector.multi_reduction <add>, %42, %cst_21 [0] : vector<2x512xf32> to vector<512xf32>
    %44 = vector.shape_cast %43 : vector<512xf32> to vector<1x512xf32>
    %45 = arith.mulf %42, %42 : vector<2x512xf32>
    %cst_22 = arith.constant dense<0.000000e+00> : vector<512xf32>
    %46 = vector.multi_reduction <add>, %45, %cst_22 [0] : vector<2x512xf32> to vector<512xf32>
    %47 = vector.shape_cast %46 : vector<512xf32> to vector<1x512xf32>
    %48 = tpu.concatenate %44, %47 in 0 : vector<1x512xf32>, vector<1x512xf32> -> vector<2x512xf32>
    %c0_23 = arith.constant 0 : index
    %c0_24 = arith.constant 0 : index
    %49 = vector.load %arg7[%c0_23, %c0_24] : memref<512x8xf32, #tpu.memory_space<vmem>>, vector<512x8xf32>
    %cst_25 = arith.constant dense<0.000000e+00> : vector<2x8xf32>
    %50 = tpu.matmul %48, %49, %cst_25 {dimension_numbers = #tpu.dot_dimension_numbers<[1], [0], [0], [1], [0, 0, 1, 1], [], []>} : vector<2x512xf32>, vector<512x8xf32>, vector<2x8xf32> -> vector<2x8xf32>
    %cst_26 = arith.constant 5.000000e-01 : f32
    %51 = vector.broadcast %cst_26 : f32 to vector<2x8xf32>
    %52 = arith.mulf %50, %51 : vector<2x8xf32>
    %53 = vector.extract_strided_slice %52 {offsets = [0, 0], sizes = [1, 8], strides = [1, 1]} : vector<2x8xf32> to vector<1x8xf32>
    %54 = vector.extract_strided_slice %52 {offsets = [1, 0], sizes = [1, 8], strides = [1, 1]} : vector<2x8xf32> to vector<1x8xf32>
    %55 = arith.mulf %53, %53 : vector<1x8xf32>
    %56 = arith.subf %54, %55 : vector<1x8xf32>
    %cst_27 = arith.constant 0.000000e+00 : f32
    %57 = vector.broadcast %cst_27 : f32 to vector<1x8xf32>
    %58 = arith.maximumf %56, %57 : vector<1x8xf32>
    %cst_28 = arith.constant 9.99999974E-6 : f32
    %59 = vector.broadcast %cst_28 : f32 to vector<1x8xf32>
    %60 = arith.addf %58, %59 : vector<1x8xf32>
    %61 = math.rsqrt %60 : vector<1x8xf32>
    %c0_29 = arith.constant 0 : index
    %c0_30 = arith.constant 0 : index
    %62 = vector.load %arg9[%c0_29, %c0_30] : memref<2x8xf32, #tpu.memory_space<vmem>>, vector<1x8xf32>
    %63 = arith.mulf %61, %62 : vector<1x8xf32>
    %c1_31 = arith.constant 1 : index
    %c0_32 = arith.constant 0 : index
    %64 = vector.load %arg9[%c1_31, %c0_32] : memref<2x8xf32, #tpu.memory_space<vmem>>, vector<1x8xf32>
    %65 = arith.mulf %53, %63 : vector<1x8xf32>
    %66 = arith.subf %64, %65 : vector<1x8xf32>
    %67 = tpu.concatenate %63, %66 in 0 : vector<1x8xf32>, vector<1x8xf32> -> vector<2x8xf32>
    %c0_33 = arith.constant 0 : index
    %c0_34 = arith.constant 0 : index
    %68 = vector.load %arg8[%c0_33, %c0_34] : memref<8x512xf32, #tpu.memory_space<vmem>>, vector<8x512xf32>
    %cst_35 = arith.constant dense<0.000000e+00> : vector<2x512xf32>
    %69 = tpu.matmul %67, %68, %cst_35 {dimension_numbers = #tpu.dot_dimension_numbers<[1], [0], [0], [1], [0, 0, 1, 1], [], []>} : vector<2x8xf32>, vector<8x512xf32>, vector<2x512xf32> -> vector<2x512xf32>
    %70 = vector.extract_strided_slice %69 {offsets = [0, 0], sizes = [1, 512], strides = [1, 1]} : vector<2x512xf32> to vector<1x512xf32>
    %71 = vector.broadcast %70 : vector<1x512xf32> to vector<2x512xf32>
    %72 = arith.mulf %42, %71 : vector<2x512xf32>
    %73 = vector.extract_strided_slice %69 {offsets = [1, 0], sizes = [1, 512], strides = [1, 1]} : vector<2x512xf32> to vector<1x512xf32>
    %74 = vector.broadcast %73 : vector<1x512xf32> to vector<2x512xf32>
    %75 = arith.addf %72, %74 : vector<2x512xf32>
    %cst_36 = arith.constant 2.000000e-01 : f32
    %76 = vector.broadcast %cst_36 : f32 to vector<2x512xf32>
    %77 = arith.mulf %76, %75 : vector<2x512xf32>
    %78 = arith.maximumf %75, %77 : vector<2x512xf32>
    %79 = arith.truncf %78 : vector<2x512xf32> to vector<2x512xbf16>
    %c0_37 = arith.constant 0 : index
    %c0_38 = arith.constant 0 : index
    %80 = vector.load %arg10[%c0_37, %c0_38] : memref<512x784xbf16, #tpu.memory_space<vmem>>, vector<512x784xbf16>
    %cst_39 = arith.constant dense<0.000000e+00> : vector<2x784xf32>
    %81 = tpu.matmul %79, %80, %cst_39 {dimension_numbers = #tpu.dot_dimension_numbers<[1], [0], [0], [1], [0, 0, 1, 1], [], []>} : vector<2x512xbf16>, vector<512x784xbf16>, vector<2x784xf32> -> vector<2x784xf32>
    %c0_40 = arith.constant 0 : index
    %c0_41 = arith.constant 0 : index
    %82 = vector.load %arg11[%c0_40, %c0_41] : memref<1x784xf32, #tpu.memory_space<vmem>>, vector<1x784xf32>
    %83 = vector.broadcast %82 : vector<1x784xf32> to vector<2x784xf32>
    %84 = arith.addf %81, %83 : vector<2x784xf32>
    %85 = math.tanh %84 : vector<2x784xf32>
    %c0_42 = arith.constant 0 : index
    %c0_43 = arith.constant 0 : index
    %86 = vector.load %arg12[%c0_42, %c0_43] : memref<2x784xf32, #tpu.memory_space<vmem>>, vector<2x784xf32>
    tpu.vector_store %arg12[%c0_42, %c0_43], %85 {strides = array<i32>} : memref<2x784xf32, #tpu.memory_space<vmem>>, vector<2x784xf32>,
    return
  }
  func.func @transform_0(%arg0: i32) -> (i32, i32) {
    %c0_i32 = arith.constant 0 : i32
    %c0_i32_0 = arith.constant 0 : i32
    %c0_i32_1 = arith.constant 0 : i32
    return %c0_i32, %c0_i32_0 : i32, i32
  }
  func.func @transform_1(%arg0: i32) -> (i32, i32) {
    %c0_i32 = arith.constant 0 : i32
    %c0_i32_0 = arith.constant 0 : i32
    %c0_i32_1 = arith.constant 0 : i32
    return %c0_i32, %c0_i32_0 : i32, i32
  }
  func.func @transform_2(%arg0: i32) -> (i32, i32) {
    %c0_i32 = arith.constant 0 : i32
    %c0_i32_0 = arith.constant 0 : i32
    %c0_i32_1 = arith.constant 0 : i32
    return %c0_i32, %c0_i32_0 : i32, i32
  }
  func.func @transform_3(%arg0: i32) -> (i32, i32) {
    %c0_i32 = arith.constant 0 : i32
    %c0_i32_0 = arith.constant 0 : i32
    %c0_i32_1 = arith.constant 0 : i32
    return %c0_i32, %c0_i32_0 : i32, i32
  }
  func.func @transform_4(%arg0: i32) -> (i32, i32) {
    %c0_i32 = arith.constant 0 : i32
    %c0_i32_0 = arith.constant 0 : i32
    %c0_i32_1 = arith.constant 0 : i32
    return %c0_i32, %c0_i32_0 : i32, i32
  }
  func.func @transform_5(%arg0: i32) -> (i32, i32) {
    %c0_i32 = arith.constant 0 : i32
    %c0_i32_0 = arith.constant 0 : i32
    %c0_i32_1 = arith.constant 0 : i32
    return %c0_i32, %c0_i32_0 : i32, i32
  }
  func.func @transform_6(%arg0: i32) -> (i32, i32) {
    %c0_i32 = arith.constant 0 : i32
    %c0_i32_0 = arith.constant 0 : i32
    %c0_i32_1 = arith.constant 0 : i32
    return %c0_i32, %c0_i32_0 : i32, i32
  }
  func.func @transform_7(%arg0: i32) -> (i32, i32) {
    %c0_i32 = arith.constant 0 : i32
    %c0_i32_0 = arith.constant 0 : i32
    %c0_i32_1 = arith.constant 0 : i32
    return %c0_i32, %c0_i32_0 : i32, i32
  }
  func.func @transform_8(%arg0: i32) -> (i32, i32) {
    %c0_i32 = arith.constant 0 : i32
    %c0_i32_0 = arith.constant 0 : i32
    %c0_i32_1 = arith.constant 0 : i32
    return %c0_i32, %c0_i32_0 : i32, i32
  }
  func.func @transform_9(%arg0: i32) -> (i32, i32) {
    %c0_i32 = arith.constant 0 : i32
    %c0_i32_0 = arith.constant 0 : i32
    %c0_i32_1 = arith.constant 0 : i32
    return %c0_i32, %c0_i32_0 : i32, i32
  }
  func.func @transform_10(%arg0: i32) -> (i32, i32) {
    %c0_i32 = arith.constant 0 : i32
    %c0_i32_0 = arith.constant 0 : i32
    %c0_i32_1 = arith.constant 0 : i32
    return %c0_i32, %c0_i32_0 : i32, i32
  }
  func.func @transform_11(%arg0: i32) -> (i32, i32) {
    %c0_i32 = arith.constant 0 : i32
    %c0_i32_0 = arith.constant 0 : i32
    %c0_i32_1 = arith.constant 0 : i32
    return %c0_i32, %c0_i32_0 : i32, i32
  }
}

</mosaic_0001>

<bundles_post_ra>
// kernel: decoder_forward.1
= control target key start
LH: loop header
LB: loop body
LE: loop exit
PB: predicated region body
PF: predicated region fallthrough
CT: control target
= control target key end

     0   :  { %v3776_v1 = vmov 0   ;;  %v3777_v2 = vmov 0.0   ;;  %vm65_vm0 = vcmask 261120   ;;  %vm110_vm1 = vcmask 1041408   ;;  %s5066_s1 = inlined_call_operand.vmem [shape: bf16[32,144], index: 1, kind: input, shape index: {}]   ;;  %s5067_s0 = inlined_call_operand.vmem [shape: f32[2,32], index: 0, kind: input, shape index: {}]   ;;  %s5068_s2 = inlined_call_operand.vmem [shape: f32[144,16], index: 2, kind: input, shape index: {}]   ;;  %s5069_s3 = inlined_call_operand.vmem [shape: f32[16,144], index: 3, kind: input, shape index: {}]   ;;  %s5070_s5 = inlined_call_operand.vmem [shape: bf16[144,512], index: 5, kind: input, shape index: {}]   ;;  %s5071_s4 = inlined_call_operand.vmem [shape: f32[2,16], index: 4, kind: input, shape index: {}]   ;;  %s5072_s6 = inlined_call_operand.vmem [shape: f32[512,8], index: 6, kind: input, shape index: {}]   ;;  %s5073_s7 = inlined_call_operand.vmem [shape: f32[8,512], index: 7, kind: input, shape index: {}]   ;;  %s5074_s9 = inlined_call_operand.vmem [shape: bf16[512,784], index: 9, kind: input, shape index: {}]   ;;  %s5075_s8 = inlined_call_operand.vmem [shape: f32[2,8], index: 8, kind: input, shape index: {}]   ;;  %s5076_s10 = inlined_call_operand.vmem [shape: f32[1,784], index: 10, kind: input, shape index: {}]   ;;  %s5077_s11 = inlined_call_operand.vmem [shape: f32[2,784], index: 11, kind: output, shape index: {}]  }
   0x1   :  { %v3378_v0 = vld [vmem:[%s5066_s1 + $0x14] ss:$8 sps:$4 sm:$0xff]   ;;  %101 = vmatprep.mubr.bf16.mxu0 %v3776_v1  ;;  %167 = vmatprep.subr.mxu1 %v3777_v2  ;;  %v3380_v3 = vld [vmem:[%s5066_s1 + $0x10] ss:$8 sps:$4 sm:$0xff]   ;;  %v3381_v4 = vld [vmem:[%s5066_s1 + $0x4] ss:$8 sps:$4 sm:$0xff]  }
   0x2   :  { %81 = vmatprep.subr.bf16.mxu0 %v3378_v0  ;;  %v3383_v5 = vld [vmem:[%s5066_s1] ss:$8 sps:$4 sm:$0xff]   ;;  %v160_v7 = vld [vmem:[%s5068_s2 + $0x78] sm:$0xff]  ;;  %v159_v8 = vld [vmem:[%s5068_s2 + $0x70] sm:$0xff]  ;;  %vm118_vm2 = vcmask 123904   ;;  %vm142_vm3 = vcmask 1040384  }
   0x3   :  { %82 = vmatpush1.bf16.msra.mxu0 %v3380_v3  ;;  %v39_v6 = vld [vmem:[%s5067_s0] sm:$0x3]  ;;  %168 = vmatpush1.msra.mxu1 %v160_v7  ;;  %v158_v9 = vld [vmem:[%s5068_s2 + $0x68] sm:$0xff]  ;;  %v156_v12 = vld [vmem:[%s5068_s2 + $0x58] sm:$0xff]  ;;  %vm163_vm4 = vcmask 130048   ;;  %vm962_vm5 = vcmask 64512  }
   0x4   :  { %83 = vmatprep.subr.bf16.mxu0 %v3381_v4  ;;  %169 = vmatprep.subr.mxu1 %v3777_v2  ;;  %v40_v10 = vpack.c.bf16 %v39_v6, %v39_v6  ;;  %v157_v11 = vld [vmem:[%s5068_s2 + $0x60] sm:$0xff]  ;;  %v155_v13 = vld [vmem:[%s5068_s2 + $0x50] sm:$0xff]  ;;  %v154_v14 = vld [vmem:[%s5068_s2 + $0x48] sm:$0xff]  ;;  %vm2981_vm6 = vcmask 1043458   ;;  %vm2983_vm8 = vcmask 128004  }
   0x5   :  { %170 = vmatpush1.msra.mxu1 %v159_v8  ;;  %v153_v15 = vld [vmem:[%s5068_s2 + $0x40] sm:$0xff]  ;;  %v152_v16 = vld [vmem:[%s5068_s2 + $0x38] sm:$0xff]  ;;  %v151_v17 = vld [vmem:[%s5068_s2 + $0x30] sm:$0xff] }
   0x6   :  { %171 = vmatprep.subr.mxu1 %v3777_v2  ;;  %v150_v18 = vld [vmem:[%s5068_s2 + $0x28] sm:$0xff]  ;;  %v149_v19 = vld [vmem:[%s5068_s2 + $0x20] sm:$0xff]  ;;  %v148_v20 = vld [vmem:[%s5068_s2 + $0x18] sm:$0xff] }
   0x7   :  { %84 = vmatpush1.bf16.msra.mxu0 %v3383_v5  ;;  %172 = vmatpush1.msra.mxu1 %v158_v9  ;;  %v147_v21 = vld [vmem:[%s5068_s2 + $0x10] sm:$0xff]  ;;  %v146_v22 = vld [vmem:[%s5068_s2 + $0x8] sm:$0xff]  ;;  %v145_v23 = vld [vmem:[%s5068_s2] sm:$0xff] }
   0x8   :  { %173 = vmatprep.subr.mxu1 %v3777_v2  ;;  %v162_v24 = vld [vmem:[%s5068_s2 + $0x88] sm:$0xff]  ;;  %v161_v25 = vld [vmem:[%s5068_s2 + $0x80] sm:$0xff]  ;;  %v264_v62 = vld [vmem:[%s5069_s3 + $0x18] sm:$0xff] }
   0x9   :  { %174 = vmatpush1.msra.mxu1 %v157_v11  ;;  %296 = vmatprep.subr.mxu0 %v264_v62  ;;  %v263_v63 = vld [vmem:[%s5069_s3 + $0x10] sm:$0xff]  ;;  %v262_v0 = vld [vmem:[%s5069_s3 + $0x8] sm:$0xff]  ;;  %v261_v1 = vld [vmem:[%s5069_s3] sm:$0xff] }
   0xa   :  { %2994 = vmatmul.mubr.msk.bf16.vlgmr.msra.gmra.mxu0 %vm65_vm0, %v40_v10  ;;  %175 = vmatprep.subr.mxu1 %v3777_v2  ;;  %v3386_v3 = vld [vmem:[%s5070_s5 + $0xe4] ss:$16 sps:$4 sm:$0xff]   ;;  %v3387_v4 = vld [vmem:[%s5070_s5 + $0xe8] ss:$16 sps:$4 sm:$0xff]   ;;  %v3389_v5 = vld [vmem:[%s5070_s5 + $0xec] ss:$16 sps:$4 sm:$0xff]  }
   0xb   :  { %332 = vmatprep.mubr.f32.mxu0 %v3777_v2  ;;  %176 = vmatpush1.msra.mxu1 %v156_v12  ;;  %v3393_v6 = vld [vmem:[%s5070_s5 + $0xc8] ss:$16 sps:$4 sm:$0xff]   ;;  %v3395_v7 = vld [vmem:[%s5070_s5 + $0xcc] ss:$16 sps:$4 sm:$0xff]   ;;  %vm2982_vm7 = vmor %vm2981_vm6, %vm110_vm1 }
   0xc   :  { %177 = vmatprep.subr.mxu1 %v3777_v2  ;;  %297 = vmatpush1.msra.mxu0 %v263_v63  ;;  %v3401_v8 = vld [vmem:[%s5070_s5 + $0xac] ss:$16 sps:$4 sm:$0xff]   ;;  %v3399_v9 = vld [vmem:[%s5070_s5 + $0xa8] ss:$16 sps:$4 sm:$0xff]   ;;  %vm2984_vm9 = vmor %vm2983_vm8, %vm2982_vm7 }
   0xd   :  { %178 = vmatpush1.msra.mxu1 %v155_v13  ;;  %298 = vmatprep.subr.mxu0 %v262_v0  ;;  %v3407_v10 = vld [vmem:[%s5070_s5 + $0x8c] ss:$16 sps:$4 sm:$0xff]   ;;  %v3405_v11 = vld [vmem:[%s5070_s5 + $0x88] ss:$16 sps:$4 sm:$0xff]  }
   0xe   :  { %179 = vmatprep.subr.mxu1 %v3777_v2  ;;  %299 = vmatpush1.msra.mxu0 %v261_v1  ;;  %v3413_v12 = vld [vmem:[%s5070_s5 + $0x6c] ss:$16 sps:$4 sm:$0xff]   ;;  %v3411_v13 = vld [vmem:[%s5070_s5 + $0x68] ss:$16 sps:$4 sm:$0xff]  }
   0xf   :  { %180 = vmatpush1.msra.mxu1 %v154_v14  ;;  %584 = vmatprep.subr.bf16.mxu0 %v3386_v3 }
  0x10   :  { %181 = vmatprep.subr.mxu1 %v3777_v2 }
  0x11   :  { %182 = vmatpush1.msra.mxu1 %v153_v15 }
  0x12   :  { %183 = vmatprep.subr.mxu1 %v3777_v2 }
  0x13   :  { %184 = vmatpush1.msra.mxu1 %v152_v16 }
  0x14   :  { %185 = vmatprep.subr.mxu1 %v3777_v2 }
  0x15   :  { %186 = vmatpush1.msra.mxu1 %v151_v17 }
  0x16   :  { %187 = vmatprep.subr.mxu1 %v3777_v2 }
  0x17   :  { %188 = vmatpush1.msra.mxu1 %v150_v18 }
  0x18   :  { %189 = vmatprep.subr.mxu1 %v3777_v2 }
  0x19   :  { %190 = vmatpush1.msra.mxu1 %v149_v19 }
  0x1a   :  { %191 = vmatprep.subr.mxu1 %v3777_v2 }
  0x1b   :  { %192 = vmatpush1.msra.mxu1 %v148_v20 }
  0x1c   :  { %193 = vmatprep.subr.mxu1 %v3777_v2 }
  0x1d   :  { %194 = vmatpush1.msra.mxu1 %v147_v21 }
  0x1e   :  { %195 = vmatprep.subr.mxu1 %v3777_v2 }
  0x1f   :  { %196 = vmatpush1.msra.mxu1 %v146_v22  ;;  %v246_v22 = vld [vmem:[%s5071_s4] sm:$0x1] }
  0x20   :  { %197 = vmatprep.subr.mxu1 %v3777_v2 }
  0x21   :  { %198 = vmatpush1.msra.mxu1 %v145_v23  ;;  %v248_v23 = vrot.slane %v246_v22, 7  ;;  %v759_v22 = vld [vmem:[%s5072_s6 + $0xe8] sm:$0xff] }
  0x22   :  { %227 = vmatprep.subr.mxu1 %v3777_v2 }
  0x23   :  { %228 = vmatpush2.msra.mxu1 %v162_v24 }
  0x24   :  { %229 = vmatprep.subr.mxu1 %v3777_v2 }
  0x25   :  { %230 = vmatpush2.msra.mxu1 %v161_v25 }
  0x26   :  { %625 = vmatprep.subr.bf16.mxu1 %v3389_v5 }
  0xca   :  { %v3927_v26 = vpop.f32.mrf.mxu0 }
  0xcb   :  { %v111_v27 = vsel %vm110_vm1, %v3927_v26, 0.0  ;;  %v126_v28 = vmul.f32 %v3927_v26, %v3927_v26 }
  0xcc   :  { %v112_v29 = vrot.slane %v111_v27, 4  ;;  %v3933_v30 = vpop.f32.mrf.mxu0 }
  0xcd   :  { %v128_v31 = vsel %vm110_vm1, %v126_v28, 0.0  ;;  %v119_v32 = vsel %vm118_vm2, %v3933_v30, 0.0  ;;  %v127_v33 = vmul.f32 %v3933_v30, %v3933_v30  ;;  %v251_v28 = vld [vmem:[%s5071_s4 + $0x1] sm:$0x1] }
  0xce   :  { %v113_v34 = vadd.f32 %v112_v29, %v111_v27  ;;  %v129_v35 = vrot.slane %v128_v31, 4  ;;  %v120_v36 = vrot.slane %v119_v32, 4  ;;  %v107_v37 = vpop.f32.mrf.mxu0 }
  0xcf   :  { %v135_v38 = vsel %vm118_vm2, %v127_v33, 0.0  ;;  %v3384_v33 = vld [vmem:[%s5070_s5 + $0xe0] ss:$16 sps:$4 sm:$0xff]   ;;  %v3398_v37 = vld [vmem:[%s5070_s5 + $0xa4] ss:$16 sps:$4 sm:$0xff]  }
  0xd0   :  { %v114_v39 = vrot.slane %v113_v34, 2  ;;  %v130_v40 = vadd.f32 %v129_v35, %v128_v31  ;;  %v121_v41 = vadd.f32 %v120_v36, %v119_v32  ;;  %v136_v42 = vrot.slane %v135_v38, 4  ;;  %v108_v43 = vpop.f32.mrf.mxu0  ;;  %v3390_v36 = vld [vmem:[%s5070_s5 + $0xc0] ss:$16 sps:$4 sm:$0xff]  }
  0xd1   :  { %v3416_v43 = vld [vmem:[%s5070_s5 + $0x44] ss:$16 sps:$4 sm:$0xff]  }
  0xd2   :  { %v131_v44 = vrot.slane %v130_v40, 2  ;;  %v122_v45 = vrot.slane %v121_v41, 2  ;;  %v137_v46 = vadd.f32 %v136_v42, %v135_v38  ;;  %v115_v47 = vadd.f32 %v114_v39, %v113_v34  ;;  %v3392_v34 = vld [vmem:[%s5070_s5 + $0xc4] ss:$16 sps:$4 sm:$0xff]   ;;  %v3396_v38 = vld [vmem:[%s5070_s5 + $0xa0] ss:$16 sps:$4 sm:$0xff]  }
  0xd3   :  { %v3404_v39 = vld [vmem:[%s5070_s5 + $0x84] ss:$16 sps:$4 sm:$0xff]   ;;  %v3408_v42 = vld [vmem:[%s5070_s5 + $0x60] ss:$16 sps:$4 sm:$0xff]  }
  0xd4   :  { %v123_v48 = vadd.f32 %v122_v45, %v121_v41  ;;  %v138_v49 = vrot.slane %v137_v46, 2  ;;  %v132_v50 = vadd.f32 %v131_v44, %v130_v40  ;;  %v116_v54 = vrot.slane %v115_v47, 1  ;;  %v3402_v40 = vld [vmem:[%s5070_s5 + $0x80] ss:$16 sps:$4 sm:$0xff]   ;;  %v3410_v41 = vld [vmem:[%s5070_s5 + $0x64] ss:$16 sps:$4 sm:$0xff]  }
  0xd5   :  { %v3419_v44 = vld [vmem:[%s5070_s5 + $0x4c] ss:$16 sps:$4 sm:$0xff]   ;;  %v3414_v45 = vld [vmem:[%s5070_s5 + $0x40] ss:$16 sps:$4 sm:$0xff]  }
  0xd6   :  { %v124_v51 = vrot.slane %v123_v48, 1  ;;  %v139_v52 = vadd.f32 %v138_v49, %v137_v46  ;;  %v133_v53 = vrot.slane %v132_v50, 1  ;;  %v117_v59 = vadd.f32 %v116_v54, %v115_v47  ;;  %v3417_v46 = vld [vmem:[%s5070_s5 + $0x48] ss:$16 sps:$4 sm:$0xff]   ;;  %v3422_v47 = vld [vmem:[%s5070_s5 + $0x24] ss:$16 sps:$4 sm:$0xff]  }
  0xd7   :  { %v3420_v49 = vld [vmem:[%s5070_s5 + $0x20] ss:$16 sps:$4 sm:$0xff]   ;;  %v3429_v54 = vld [vmem:[%s5070_s5 + $0x8] ss:$16 sps:$4 sm:$0xff]  }
  0xd8   :  { %v140_v55 = vrot.slane %v139_v52, 1  ;;  %v134_v56 = vadd.f32 %v133_v53, %v132_v50  ;;  %v125_v57 = vadd.f32 %v124_v51, %v123_v48  ;;  %v3425_v48 = vld [vmem:[%s5070_s5 + $0x2c] ss:$16 sps:$4 sm:$0xff]   ;;  %v3423_v50 = vld [vmem:[%s5070_s5 + $0x28] ss:$16 sps:$4 sm:$0xff]  }
  0xd9   :  { %v3428_v51 = vld [vmem:[%s5070_s5 + $0x4] ss:$16 sps:$4 sm:$0xff]   ;;  %v3426_v53 = vld [vmem:[%s5070_s5] ss:$16 sps:$4 sm:$0xff]  }
  0xda   :  { %v141_v58 = vadd.f32 %v140_v55, %v139_v52  ;;  %v143_v61 = vsel %vm142_vm3, %v117_v59, %v134_v56  ;;  %v3431_v52 = vld [vmem:[%s5070_s5 + $0xc] ss:$16 sps:$4 sm:$0xff]   ;;  %v3434_v55 = vld [vmem:[%s5070_s5 + $0x104] ss:$16 sps:$4 sm:$0xff]  }
  0xdb   :  { %v3437_v56 = vld [vmem:[%s5070_s5 + $0x10c] ss:$16 sps:$4 sm:$0xff]  }
  0xdc   :  { %v144_v60 = vsel %vm142_vm3, %v125_v57, %v141_v58  ;;  %v3432_v57 = vld [vmem:[%s5070_s5 + $0x100] ss:$16 sps:$4 sm:$0xff]   ;;  %v3435_v58 = vld [vmem:[%s5070_s5 + $0x108] ss:$16 sps:$4 sm:$0xff]  }
  0xdd   :  { %2995 = vmatprep.mubr.msk.f32.mxu1 %vm163_vm4, %v144_v60  ;;  %v761_v59 = vld [vmem:[%s5072_s6 + $0xf8] sm:$0xff] }
  0xde   :  { %232 = vmatmul.mubr.f32.vlgmr.msra.gmra.mxu1 %v143_v61  ;;  %v793_v60 = vld [vmem:[%s5072_s6 + $0x1f8] sm:$0xff]  ;;  %v339_v61 = vlaneseq }
  0xdf   :  { %626 = vmatpush1.bf16.msra.mxu1 %v3387_v4 }
  0xe0   :  { %627 = vmatprep.subr.bf16.mxu1 %v3395_v7  ;;  %v4076_v62 = vshrl.u32 %v339_v61, 7  ;;  %v782_v61 = vld [vmem:[%s5072_s6 + $0x1a0] sm:$0xff] }
  0xe2   :  { %v4079_v63 = vsub.s32 0, %v4076_v62  ;;  %v4082_v0 = vsub.s32 1, %v4076_v62 }
  0xe3   :  { %628 = vmatpush1.bf16.msra.mxu1 %v3393_v6 }
  0xe4   :  { %629 = vmatprep.subr.bf16.mxu1 %v3401_v8 }
  0xe7   :  { %630 = vmatpush1.bf16.msra.mxu1 %v3399_v9 }
  0xe8   :  { %631 = vmatprep.subr.bf16.mxu1 %v3407_v10 }
  0xeb   :  { %632 = vmatpush1.bf16.msra.mxu1 %v3405_v11 }
  0xec   :  { %633 = vmatprep.subr.bf16.mxu1 %v3413_v12 }
  0xef   :  { %634 = vmatpush1.bf16.msra.mxu1 %v3411_v13 }
  0xf0   :  { %635 = vmatprep.subr.bf16.mxu1 %v3419_v44  ;;  %v754_v44 = vld [vmem:[%s5072_s6 + $0xc0] sm:$0xff] }
  0xf3   :  { %636 = vmatpush1.bf16.msra.mxu1 %v3417_v46  ;;  %v738_v46 = vld [vmem:[%s5072_s6 + $0x40] sm:$0xff] }
  0xf4   :  { %637 = vmatprep.subr.bf16.mxu1 %v3425_v48  ;;  %v753_v48 = vld [vmem:[%s5072_s6 + $0xb8] sm:$0xff] }
  0xf7   :  { %638 = vmatpush1.bf16.msra.mxu1 %v3423_v50  ;;  %v737_v50 = vld [vmem:[%s5072_s6 + $0x38] sm:$0xff] }
  0xf8   :  { %639 = vmatprep.subr.bf16.mxu1 %v3431_v52  ;;  %v752_v52 = vld [vmem:[%s5072_s6 + $0xb0] sm:$0xff] }
  0xfb   :  { %640 = vmatpush1.bf16.msra.mxu1 %v3429_v54  ;;  %v736_v54 = vld [vmem:[%s5072_s6 + $0x30] sm:$0xff] }
  0xfc   :  { %655 = vmatprep.subr.bf16.mxu1 %v3437_v56  ;;  %v751_v56 = vld [vmem:[%s5072_s6 + $0xa8] sm:$0xff] }
  0xff   :  { %656 = vmatpush2.bf16.msra.mxu1 %v3435_v58  ;;  %v735_v58 = vld [vmem:[%s5072_s6 + $0x28] sm:$0xff] }
 0x100   :  { %3296 = vmatprep.subr.mxu1 %v793_v60  ;;  %v750_v60 = vld [vmem:[%s5072_s6 + $0xa0] sm:$0xff] }
 0x19e   :  { %v233_v14 = vpop.f32.mrf.mxu1 }
 0x19f   :  { %v237_v15 = vmul.f32 0.5, %v233_v14 }
 0x1a0   :  { %v235_v16 = vpop.f32.mrf.mxu1 }
 0x1a1   :  { %v238_v17 = vmul.f32 %v237_v15, %v237_v15 }
 0x1a3   :  { %v240_v18 = vrot.slane %v238_v17, 7 }
 0x1a5   :  { %v242_v19 = vsub.f32 %v237_v15, %v240_v18  ;;  %v777_v18 = vld [vmem:[%s5072_s6 + $0x178] sm:$0xff] }
 0x1a7   :  { %v243_v20 = vmax.f32 %v242_v19, 0.0  ;;  %v792_v19 = vld [vmem:[%s5072_s6 + $0x1f0] sm:$0xff] }
 0x1a9   :  { %v244_v21 = vadd.f32 1e-05, %v243_v20  ;;  %v744_v20 = vld [vmem:[%s5072_s6 + $0x70] sm:$0xff] }
 0x1ab   :  { %3758 = vrsqrt.f32 %v244_v21  ;;  %v776_v21 = vld [vmem:[%s5072_s6 + $0x170] sm:$0xff] }
 0x1b8   :  { %v3759_v24 = vpop.eup %3758 }
 0x1b9   :  { %v250_v25 = vmul.f32 %v3759_v24, %v248_v23  ;;  %v791_v23 = vld [vmem:[%s5072_s6 + $0x1e8] sm:$0xff] }
 0x1ba   :  { %v743_v24 = vld [vmem:[%s5072_s6 + $0x68] sm:$0xff] }
 0x1bb   :  { %v253_v27 = vrot.slane %v250_v25, 1  ;;  %v775_v25 = vld [vmem:[%s5072_s6 + $0x168] sm:$0xff] }
 0x1bd   :  { %v255_v29 = vmul.f32 %v253_v27, %v237_v15 }
 0x1bf   :  { %v256_v31 = vsub.f32 %v251_v28, %v255_v29  ;;  %v790_v28 = vld [vmem:[%s5072_s6 + $0x1e0] sm:$0xff] }
 0x1c0   :  { %v742_v29 = vld [vmem:[%s5072_s6 + $0x60] sm:$0xff] }
 0x1c1   :  { %v258_v32 = vrot.slane %v256_v31, 7  ;;  %v774_v31 = vld [vmem:[%s5072_s6 + $0x160] sm:$0xff] }
 0x1c3   :  { %v260_v35 = vsel %vm142_vm3, %v253_v27, %v258_v32  ;;  %v758_v27 = vld [vmem:[%s5072_s6 + $0xe0] sm:$0xff]  ;;  %v757_v32 = vld [vmem:[%s5072_s6 + $0xd8] sm:$0xff] }
 0x1c4   :  { %2996 = vmatmul.mubr.msk.f32.vlgmr.msra.gmra.mxu0 %vm163_vm4, %v260_v35  ;;  %v773_v35 = vld [vmem:[%s5072_s6 + $0x158] sm:$0xff] }
 0x1c5   :  { %585 = vmatpush1.bf16.msra.mxu0 %v3384_v33  ;;  %v789_v33 = vld [vmem:[%s5072_s6 + $0x1d8] sm:$0xff] }
 0x1c6   :  { %586 = vmatprep.subr.bf16.mxu0 %v3392_v34  ;;  %v741_v34 = vld [vmem:[%s5072_s6 + $0x58] sm:$0xff] }
 0x1c9   :  { %587 = vmatpush1.bf16.msra.mxu0 %v3390_v36  ;;  %v756_v36 = vld [vmem:[%s5072_s6 + $0xd0] sm:$0xff] }
 0x1ca   :  { %588 = vmatprep.subr.bf16.mxu0 %v3398_v37  ;;  %v788_v37 = vld [vmem:[%s5072_s6 + $0x1d0] sm:$0xff] }
 0x1cd   :  { %589 = vmatpush1.bf16.msra.mxu0 %v3396_v38  ;;  %v740_v38 = vld [vmem:[%s5072_s6 + $0x50] sm:$0xff] }
 0x1ce   :  { %590 = vmatprep.subr.bf16.mxu0 %v3404_v39  ;;  %v772_v39 = vld [vmem:[%s5072_s6 + $0x150] sm:$0xff] }
 0x1d1   :  { %591 = vmatpush1.bf16.msra.mxu0 %v3402_v40  ;;  %v755_v40 = vld [vmem:[%s5072_s6 + $0xc8] sm:$0xff] }
 0x1d2   :  { %592 = vmatprep.subr.bf16.mxu0 %v3410_v41  ;;  %v787_v41 = vld [vmem:[%s5072_s6 + $0x1c8] sm:$0xff] }
 0x1d5   :  { %593 = vmatpush1.bf16.msra.mxu0 %v3408_v42  ;;  %v739_v42 = vld [vmem:[%s5072_s6 + $0x48] sm:$0xff] }
 0x1d6   :  { %594 = vmatprep.subr.bf16.mxu0 %v3416_v43  ;;  %v771_v43 = vld [vmem:[%s5072_s6 + $0x148] sm:$0xff] }
 0x1d9   :  { %595 = vmatpush1.bf16.msra.mxu0 %v3414_v45  ;;  %v786_v45 = vld [vmem:[%s5072_s6 + $0x1c0] sm:$0xff] }
 0x1da   :  { %596 = vmatprep.subr.bf16.mxu0 %v3422_v47  ;;  %v770_v47 = vld [vmem:[%s5072_s6 + $0x140] sm:$0xff] }
 0x1dd   :  { %597 = vmatpush1.bf16.msra.mxu0 %v3420_v49  ;;  %v785_v49 = vld [vmem:[%s5072_s6 + $0x1b8] sm:$0xff] }
 0x1de   :  { %598 = vmatprep.subr.bf16.mxu0 %v3428_v51  ;;  %v769_v51 = vld [vmem:[%s5072_s6 + $0x138] sm:$0xff] }
 0x1e1   :  { %599 = vmatpush1.bf16.msra.mxu0 %v3426_v53  ;;  %v784_v53 = vld [vmem:[%s5072_s6 + $0x1b0] sm:$0xff] }
 0x1e2   :  { %614 = vmatprep.subr.bf16.mxu0 %v3434_v55  ;;  %v768_v55 = vld [vmem:[%s5072_s6 + $0x130] sm:$0xff] }
 0x1e5   :  { %615 = vmatpush2.bf16.msra.mxu0 %v3432_v57  ;;  %v783_v57 = vld [vmem:[%s5072_s6 + $0x1a8] sm:$0xff] }
 0x1e6   :  { %3261 = vmatprep.subr.mxu0 %v761_v59  ;;  %v767_v59 = vld [vmem:[%s5072_s6 + $0x128] sm:$0xff] }
 0x284   :  { %v334_v1 = vpop.f32.mrf.mxu0 }
 0x285   :  { %v342_v3 = vrot.slane %v334_v1, %v4079_v63  ;;  %v352_v6 = vrot.slane %v334_v1, %v4082_v0  ;;  %v734_v1 = vld [vmem:[%s5072_s6 + $0x20] sm:$0xff] }
 0x286   :  { %v336_v4 = vpop.f32.mrf.mxu0 }
 0x287   :  { %v347_v5 = vmul.f32 %v342_v3, %v3927_v26  ;;  %v346_v7 = vrot.slane %v336_v4, %v4079_v63  ;;  %v356_v10 = vrot.slane %v336_v4, %v4082_v0  ;;  %v745_v26 = vld [vmem:[%s5072_s6 + $0x78] sm:$0xff]  ;;  %v766_v3 = vld [vmem:[%s5072_s6 + $0x120] sm:$0xff] }
 0x288   :  { %v749_v4 = vld [vmem:[%s5072_s6 + $0x98] sm:$0xff] }
 0x289   :  { %v357_v8 = vadd.f32 %v352_v6, %v347_v5  ;;  %v348_v9 = vmul.f32 %v346_v7, %v3933_v30  ;;  %v760_v30 = vld [vmem:[%s5072_s6 + $0xf0] sm:$0xff]  ;;  %v781_v5 = vld [vmem:[%s5072_s6 + $0x198] sm:$0xff] }
 0x28a   :  { %v733_v6 = vld [vmem:[%s5072_s6 + $0x18] sm:$0xff] }
 0x28b   :  { %v359_v11 = vmul.f32 0.2, %v357_v8  ;;  %v358_v12 = vadd.f32 %v356_v10, %v348_v9  ;;  %v765_v7 = vld [vmem:[%s5072_s6 + $0x118] sm:$0xff]  ;;  %v780_v9 = vld [vmem:[%s5072_s6 + $0x190] sm:$0xff] }
 0x28c   :  { %v732_v10 = vld [vmem:[%s5072_s6 + $0x10] sm:$0xff] }
 0x28d   :  { %v360_v13 = vmul.f32 0.2, %v358_v12  ;;  %v361_v14 = vmax.f32 %v357_v8, %v359_v11  ;;  %v748_v8 = vld [vmem:[%s5072_s6 + $0x90] sm:$0xff] }
 0x28e   :  { %v764_v11 = vld [vmem:[%s5072_s6 + $0x110] sm:$0xff] }
 0x28f   :  { %v362_v15 = vmax.f32 %v358_v12, %v360_v13  ;;  %v363_v17 = vpack.c.bf16 %v361_v14, %v361_v14  ;;  %v747_v12 = vld [vmem:[%s5072_s6 + $0x88] sm:$0xff] }
 0x290   :  { %v779_v13 = vld [vmem:[%s5072_s6 + $0x188] sm:$0xff] }
 0x291   :  { %v364_v16 = vpack.c.bf16 %v362_v15, %v362_v15  ;;  %v731_v14 = vld [vmem:[%s5072_s6 + $0x8] sm:$0xff] }
 0x292   :  { %v763_v15 = vld [vmem:[%s5072_s6 + $0x108] sm:$0xff] }
 0x293   :  { %3033 = vmatprep.mubr.msk.bf16.mxu0 %vm163_vm4, %v364_v16  ;;  %3034 = vmatprep.mubr.msk.bf16.mxu1 %vm163_vm4, %v364_v16  ;;  %v746_v16 = vld [vmem:[%s5072_s6 + $0x80] sm:$0xff] }
 0x294   :  { %617 = vmatmul.mubr.bf16.vlgmr.msra.gmra.mxu0 %v363_v17  ;;  %658 = vmatmul.mubr.bf16.vlgmr.msra.gmra.mxu1 %v363_v17  ;;  %v778_v17 = vld [vmem:[%s5072_s6 + $0x180] sm:$0xff] }
 0x295   :  { %3262 = vmatpush3.msra.mxu0 %v745_v26  ;;  %3297 = vmatpush3.msra.mxu1 %v777_v18  ;;  %v730_v26 = vld [vmem:[%s5072_s6] sm:$0xff] }
 0x296   :  { %3263 = vmatprep.subr.mxu0 %v760_v30  ;;  %3298 = vmatprep.subr.mxu1 %v792_v19  ;;  %v762_v18 = vld [vmem:[%s5072_s6 + $0x100] sm:$0xff] }
 0x297   :  { %3264 = vmatpush3.msra.mxu0 %v744_v20  ;;  %3299 = vmatpush3.msra.mxu1 %v776_v21 }
 0x298   :  { %3265 = vmatprep.subr.mxu0 %v759_v22  ;;  %3300 = vmatprep.subr.mxu1 %v791_v23 }
 0x299   :  { %3266 = vmatpush3.msra.mxu0 %v743_v24  ;;  %3301 = vmatpush3.msra.mxu1 %v775_v25 }
 0x29a   :  { %3267 = vmatprep.subr.mxu0 %v758_v27  ;;  %3302 = vmatprep.subr.mxu1 %v790_v28 }
 0x29b   :  { %3268 = vmatpush3.msra.mxu0 %v742_v29  ;;  %3303 = vmatpush3.msra.mxu1 %v774_v31 }
 0x29c   :  { %3269 = vmatprep.subr.mxu0 %v757_v32  ;;  %3304 = vmatprep.subr.mxu1 %v789_v33 }
 0x29d   :  { %3270 = vmatpush3.msra.mxu0 %v741_v34  ;;  %3305 = vmatpush3.msra.mxu1 %v773_v35 }
 0x29e   :  { %3271 = vmatprep.subr.mxu0 %v756_v36  ;;  %3306 = vmatprep.subr.mxu1 %v788_v37 }
 0x29f   :  { %3272 = vmatpush3.msra.mxu0 %v740_v38  ;;  %3307 = vmatpush3.msra.mxu1 %v772_v39 }
 0x2a0   :  { %3273 = vmatprep.subr.mxu0 %v755_v40  ;;  %3308 = vmatprep.subr.mxu1 %v787_v41 }
 0x2a1   :  { %3274 = vmatpush3.msra.mxu0 %v739_v42  ;;  %3309 = vmatpush3.msra.mxu1 %v771_v43 }
 0x2a2   :  { %3275 = vmatprep.subr.mxu0 %v754_v44  ;;  %3310 = vmatprep.subr.mxu1 %v786_v45 }
 0x2a3   :  { %3276 = vmatpush3.msra.mxu0 %v738_v46  ;;  %3311 = vmatpush3.msra.mxu1 %v770_v47 }
 0x2a4   :  { %3277 = vmatprep.subr.mxu0 %v753_v48  ;;  %3312 = vmatprep.subr.mxu1 %v785_v49 }
 0x2a5   :  { %3278 = vmatpush3.msra.mxu0 %v737_v50  ;;  %3313 = vmatpush3.msra.mxu1 %v769_v51 }
 0x2a6   :  { %3279 = vmatprep.subr.mxu0 %v752_v52  ;;  %3314 = vmatprep.subr.mxu1 %v784_v53 }
 0x2a7   :  { %3280 = vmatpush3.msra.mxu0 %v736_v54  ;;  %3315 = vmatpush3.msra.mxu1 %v768_v55 }
 0x2a8   :  { %3281 = vmatprep.subr.mxu0 %v751_v56  ;;  %3316 = vmatprep.subr.mxu1 %v783_v57 }
 0x2a9   :  { %3282 = vmatpush3.msra.mxu0 %v735_v58  ;;  %3317 = vmatpush3.msra.mxu1 %v767_v59 }
 0x2aa   :  { %3283 = vmatprep.subr.mxu0 %v750_v60  ;;  %3318 = vmatprep.subr.mxu1 %v782_v61 }
 0x2ab   :  { %3284 = vmatpush3.msra.mxu0 %v734_v1  ;;  %3319 = vmatpush3.msra.mxu1 %v766_v3 }
 0x2ac   :  { %3285 = vmatprep.subr.mxu0 %v749_v4  ;;  %3320 = vmatprep.subr.mxu1 %v781_v5 }
 0x2ad   :  { %3286 = vmatpush3.msra.mxu0 %v733_v6  ;;  %3321 = vmatpush3.msra.mxu1 %v765_v7 }
 0x2ae   :  { %3287 = vmatprep.subr.mxu0 %v748_v8  ;;  %3322 = vmatprep.subr.mxu1 %v780_v9 }
 0x2af   :  { %3288 = vmatpush3.msra.mxu0 %v732_v10  ;;  %3323 = vmatpush3.msra.mxu1 %v764_v11 }
 0x2b0   :  { %3289 = vmatprep.subr.mxu0 %v747_v12  ;;  %3324 = vmatprep.subr.mxu1 %v779_v13 }
 0x2b1   :  { %3290 = vmatpush3.msra.mxu0 %v731_v14  ;;  %3325 = vmatpush3.msra.mxu1 %v763_v15 }
 0x2b2   :  { %3291 = vmatprep.subr.mxu0 %v746_v16  ;;  %3326 = vmatprep.subr.mxu1 %v778_v17 }
 0x2b3   :  { %3292 = vmatpush3.msra.mxu0 %v730_v26  ;;  %3327 = vmatpush3.msra.mxu1 %v762_v18 }
 0x354   :  { %v4278_v30 = vpop.f32.mrf.mxu0  ;;  %v4280_v19 = vpop.f32.mrf.mxu1 }
 0x355   :  { %v666_v20 = vsel %vm110_vm1, %v4278_v30, 0.0  ;;  %v694_v21 = vmul.f32 %v4278_v30, %v4278_v30  ;;  %v680_v22 = vsel %vm110_vm1, %v4280_v19, 0.0  ;;  %v696_v23 = vmul.f32 %v4280_v19, %v4280_v19 }
 0x356   :  { %v667_v24 = vrot.slane %v666_v20, 4  ;;  %v681_v25 = vrot.slane %v680_v22, 4  ;;  %v4290_v27 = vpop.f32.mrf.mxu0  ;;  %v4292_v28 = vpop.f32.mrf.mxu1 }
 0x357   :  { %v698_v29 = vsel %vm110_vm1, %v694_v21, 0.0  ;;  %v712_v31 = vsel %vm110_vm1, %v696_v23, 0.0  ;;  %v673_v32 = vsel %vm110_vm1, %v4290_v27, 0.0  ;;  %v695_v33 = vmul.f32 %v4290_v27, %v4290_v27 }
 0x358   :  { %v668_v34 = vadd.f32 %v667_v24, %v666_v20  ;;  %v699_v35 = vrot.slane %v698_v29, 4  ;;  %v682_v36 = vadd.f32 %v681_v25, %v680_v22  ;;  %v713_v37 = vrot.slane %v712_v31, 4  ;;  %v622_v38 = vpop.f32.mrf.mxu0  ;;  %v663_v39 = vpop.f32.mrf.mxu1 }
 0x359   :  { %v674_v40 = vrot.slane %v673_v32, 4  ;;  %v705_v41 = vsel %vm110_vm1, %v695_v33, 0.0  ;;  %v687_v42 = vsel %vm110_vm1, %v4292_v28, 0.0  ;;  %v697_v43 = vmul.f32 %v4292_v28, %v4292_v28  ;;  %v961_v38 = vld [vmem:[%s5073_s7 + $0x18] sm:$0xff]  ;;  %v3444_v39 = vld [vmem:[%s5074_s9 + $0x508] ss:$28 sps:$4 sm:$0xff]  }
 0x35a   :  { %v669_v44 = vrot.slane %v668_v34, 2  ;;  %v700_v45 = vadd.f32 %v699_v35, %v698_v29  ;;  %v714_v46 = vadd.f32 %v713_v37, %v712_v31  ;;  %v623_v47 = vpop.f32.mrf.mxu0  ;;  %v664_v48 = vpop.f32.mrf.mxu1  ;;  %v706_v50 = vrot.slane %v705_v41, 4  ;;  %v958_v37 = vld [vmem:[%s5073_s7] sm:$0xff] }
 0x35b   :  { %v675_v49 = vadd.f32 %v674_v40, %v673_v32  ;;  %v688_v51 = vrot.slane %v687_v42, 4  ;;  %v719_v52 = vsel %vm110_vm1, %v697_v43, 0.0  ;;  %v683_v54 = vrot.slane %v682_v36, 2  ;;  %v3446_v40 = vld [vmem:[%s5074_s9 + $0x50c] ss:$28 sps:$4 sm:$0xff]  }
 0x35c   :  { %v701_v53 = vrot.slane %v700_v45, 2  ;;  %v715_v55 = vrot.slane %v714_v46, 2  ;;  %v707_v57 = vadd.f32 %v706_v50, %v705_v41  ;;  %v720_v59 = vrot.slane %v719_v52, 4  ;;  %2646 = vmatprep.subr.bf16.mxu1 %v3446_v40  ;;  %v3450_v41 = vld [vmem:[%s5074_s9 + $0x4d0] ss:$28 sps:$4 sm:$0xff]  }
 0x35d   :  { %v676_v56 = vrot.slane %v675_v49, 2  ;;  %v689_v58 = vadd.f32 %v688_v51, %v687_v42  ;;  %v670_v60 = vadd.f32 %v669_v44, %v668_v34  ;;  %v684_v7 = vadd.f32 %v683_v54, %v682_v36  ;;  %v959_v36 = vld [vmem:[%s5073_s7 + $0x8] sm:$0xff]  ;;  %v3452_v42 = vld [vmem:[%s5074_s9 + $0x4d4] ss:$28 sps:$4 sm:$0xff]   ;;  %v3458_v44 = vld [vmem:[%s5074_s9 + $0x49c] ss:$28 sps:$4 sm:$0xff]  }
 0x35e   :  { %v702_v61 = vadd.f32 %v701_v53, %v700_v45  ;;  %v716_v1 = vadd.f32 %v715_v55, %v714_v46  ;;  %v708_v4 = vrot.slane %v707_v57, 2  ;;  %v721_v6 = vadd.f32 %v720_v59, %v719_v52  ;;  %996 = vmatprep.subr.mxu0 %v959_v36  ;;  %v3456_v43 = vld [vmem:[%s5074_s9 + $0x498] ss:$28 sps:$4 sm:$0xff]   ;;  %v3462_v45 = vld [vmem:[%s5074_s9 + $0x460] ss:$28 sps:$4 sm:$0xff]  }
 0x35f   :  { %v677_v3 = vadd.f32 %v676_v56, %v675_v49  ;;  %v690_v5 = vrot.slane %v689_v58, 2  ;;  %v671_v13 = vrot.slane %v670_v60, 1  ;;  %v685_v26 = vrot.slane %v684_v7, 1  ;;  %v3464_v46 = vld [vmem:[%s5074_s9 + $0x464] ss:$28 sps:$4 sm:$0xff]  }
 0x360   :  { %v703_v8 = vrot.slane %v702_v61, 1  ;;  %v722_v10 = vrot.slane %v721_v6, 2  ;;  %v709_v12 = vadd.f32 %v708_v4, %v707_v57  ;;  %v717_v14 = vrot.slane %v716_v1, 1  ;;  %v3468_v47 = vld [vmem:[%s5074_s9 + $0x428] ss:$28 sps:$4 sm:$0xff]  }
 0x361   :  { %v691_v9 = vadd.f32 %v690_v5, %v689_v58  ;;  %v678_v11 = vrot.slane %v677_v3, 1  ;;  %v672_v23 = vadd.f32 %v671_v13, %v670_v60  ;;  %v686_v33 = vadd.f32 %v685_v26, %v684_v7  ;;  %v3470_v48 = vld [vmem:[%s5074_s9 + $0x42c] ss:$28 sps:$4 sm:$0xff]   ;;  %v3476_v50 = vld [vmem:[%s5074_s9 + $0x3f4] ss:$28 sps:$4 sm:$0xff]  }
 0x362   :  { %v710_v15 = vrot.slane %v709_v12, 1  ;;  %v723_v17 = vadd.f32 %v722_v10, %v721_v6  ;;  %v704_v18 = vadd.f32 %v703_v8, %v702_v61  ;;  %v718_v24 = vadd.f32 %v717_v14, %v716_v1  ;;  %v3474_v49 = vld [vmem:[%s5074_s9 + $0x3f0] ss:$28 sps:$4 sm:$0xff]   ;;  %v3480_v51 = vld [vmem:[%s5074_s9 + $0x3b8] ss:$28 sps:$4 sm:$0xff]  }
 0x363   :  { %v692_v16 = vrot.slane %v691_v9, 1  ;;  %v679_v20 = vadd.f32 %v678_v11, %v677_v3  ;;  %v3482_v52 = vld [vmem:[%s5074_s9 + $0x3bc] ss:$28 sps:$4 sm:$0xff]   ;;  %v3488_v54 = vld [vmem:[%s5074_s9 + $0x384] ss:$28 sps:$4 sm:$0xff]  }
 0x364   :  { %v711_v21 = vadd.f32 %v710_v15, %v709_v12  ;;  %v724_v22 = vrot.slane %v723_v17, 1  ;;  %v726_v32 = vsel %vm142_vm3, %v672_v23, %v704_v18  ;;  %v728_v35 = vsel %vm142_vm3, %v686_v33, %v718_v24  ;;  %v3486_v53 = vld [vmem:[%s5074_s9 + $0x380] ss:$28 sps:$4 sm:$0xff]   ;;  %v3492_v55 = vld [vmem:[%s5074_s9 + $0x6c8] ss:$28 sps:$4 sm:$0xff]  }
 0x365   :  { %v693_v29 = vadd.f32 %v692_v16, %v691_v9  ;;  %v3494_v56 = vld [vmem:[%s5074_s9 + $0x6cc] ss:$28 sps:$4 sm:$0xff]   ;;  %v3500_v58 = vld [vmem:[%s5074_s9 + $0x694] ss:$28 sps:$4 sm:$0xff]   ;;  %v3506_v60 = vld [vmem:[%s5074_s9 + $0x65c] ss:$28 sps:$4 sm:$0xff]  }
 0x366   :  { %v727_v25 = vsel %vm142_vm3, %v679_v20, %v711_v21  ;;  %v725_v31 = vadd.f32 %v724_v22, %v723_v17  ;;  %v3498_v57 = vld [vmem:[%s5074_s9 + $0x690] ss:$28 sps:$4 sm:$0xff]   ;;  %v3504_v59 = vld [vmem:[%s5074_s9 + $0x658] ss:$28 sps:$4 sm:$0xff]   ;;  %v3510_v61 = vld [vmem:[%s5074_s9 + $0x620] ss:$28 sps:$4 sm:$0xff]  }
 0x367   :  { %858 = vmatprep.mubr.f32.mxu0 %v727_v25  ;;  %v3512_v1 = vld [vmem:[%s5074_s9 + $0x624] ss:$28 sps:$4 sm:$0xff]   ;;  %v960_v25 = vld [vmem:[%s5073_s7 + $0x10] sm:$0xff] }
 0x368   :  { %v729_v34 = vsel %vm142_vm3, %v693_v29, %v725_v31  ;;  %859 = vmatmul.mubr.f32.vlgmr.msra.gmra.mxu0 %v726_v32  ;;  %v943_v16 = vld [vmem:[%s5075_s8] sm:$0x1]  ;;  %v948_v21 = vld [vmem:[%s5075_s8 + $0x1] sm:$0x1]  ;;  %v3440_v29 = vld [vmem:[%s5074_s9 + $0x18c] ss:$28 sps:$4 sm:$0xff]  }
 0x369   :  { %928 = vmatprep.mubr.f32.mxu1 %v729_v34  ;;  %1030 = vmatprep.mubr.f32.mxu0 %v3777_v2  ;;  %v945_v17 = vrot.slane %v943_v16, 7  ;;  %v3438_v32 = vld [vmem:[%s5074_s9 + $0x188] ss:$28 sps:$4 sm:$0xff]   ;;  %v3443_v33 = vld [vmem:[%s5074_s9 + $0x154] ss:$28 sps:$4 sm:$0xff]  }
 0x36a   :  { %929 = vmatmul.mubr.f32.vlgmr.msra.gmra.mxu1 %v728_v35  ;;  %997 = vmatpush1.msra.mxu0 %v958_v37  ;;  %v3441_v34 = vld [vmem:[%s5074_s9 + $0x150] ss:$28 sps:$4 sm:$0xff]   ;;  %v3447_v35 = vld [vmem:[%s5074_s9 + $0x118] ss:$28 sps:$4 sm:$0xff]   ;;  %v3455_v36 = vld [vmem:[%s5074_s9 + $0xe4] ss:$28 sps:$4 sm:$0xff]  }
 0x36b   :  { %1067 = vmatprep.subr.mxu0 %v961_v38  ;;  %2647 = vmatpush1.bf16.msra.mxu1 %v3444_v39  ;;  %v3453_v37 = vld [vmem:[%s5074_s9 + $0xe0] ss:$28 sps:$4 sm:$0xff]   ;;  %v3461_v38 = vld [vmem:[%s5074_s9 + $0xac] ss:$28 sps:$4 sm:$0xff]   ;;  %v3467_v40 = vld [vmem:[%s5074_s9 + $0x74] ss:$28 sps:$4 sm:$0xff]  }
 0x36c   :  { %2648 = vmatprep.subr.bf16.mxu1 %v3452_v42  ;;  %v3459_v39 = vld [vmem:[%s5074_s9 + $0xa8] ss:$28 sps:$4 sm:$0xff]   ;;  %v3473_v42 = vld [vmem:[%s5074_s9 + $0x3c] ss:$28 sps:$4 sm:$0xff]  }
 0x36f   :  { %2649 = vmatpush1.bf16.msra.mxu1 %v3450_v41  ;;  %v3465_v41 = vld [vmem:[%s5074_s9 + $0x70] ss:$28 sps:$4 sm:$0xff]  }
 0x370   :  { %2650 = vmatprep.subr.bf16.mxu1 %v3458_v44  ;;  %v3479_v44 = vld [vmem:[%s5074_s9 + $0x4] ss:$28 sps:$4 sm:$0xff]  }
 0x373   :  { %2651 = vmatpush1.bf16.msra.mxu1 %v3456_v43  ;;  %v3471_v43 = vld [vmem:[%s5074_s9 + $0x38] ss:$28 sps:$4 sm:$0xff]  }
 0x374   :  { %2652 = vmatprep.subr.bf16.mxu1 %v3464_v46  ;;  %v3485_v46 = vld [vmem:[%s5074_s9 + $0x34c] ss:$28 sps:$4 sm:$0xff]  }
 0x377   :  { %2653 = vmatpush1.bf16.msra.mxu1 %v3462_v45  ;;  %v3477_v45 = vld [vmem:[%s5074_s9] ss:$28 sps:$4 sm:$0xff]  }
 0x378   :  { %2654 = vmatprep.subr.bf16.mxu1 %v3470_v48  ;;  %v3491_v48 = vld [vmem:[%s5074_s9 + $0x314] ss:$28 sps:$4 sm:$0xff]  }
 0x37b   :  { %2655 = vmatpush1.bf16.msra.mxu1 %v3468_v47  ;;  %v3483_v47 = vld [vmem:[%s5074_s9 + $0x348] ss:$28 sps:$4 sm:$0xff]  }
 0x37c   :  { %2656 = vmatprep.subr.bf16.mxu1 %v3476_v50  ;;  %v3497_v50 = vld [vmem:[%s5074_s9 + $0x2dc] ss:$28 sps:$4 sm:$0xff]  }
 0x37f   :  { %2657 = vmatpush1.bf16.msra.mxu1 %v3474_v49  ;;  %v3489_v49 = vld [vmem:[%s5074_s9 + $0x310] ss:$28 sps:$4 sm:$0xff]  }
 0x380   :  { %2658 = vmatprep.subr.bf16.mxu1 %v3482_v52  ;;  %v3503_v52 = vld [vmem:[%s5074_s9 + $0x2a4] ss:$28 sps:$4 sm:$0xff]  }
 0x383   :  { %2659 = vmatpush1.bf16.msra.mxu1 %v3480_v51  ;;  %v3495_v51 = vld [vmem:[%s5074_s9 + $0x2d8] ss:$28 sps:$4 sm:$0xff]  }
 0x384   :  { %2660 = vmatprep.subr.bf16.mxu1 %v3488_v54  ;;  %v3509_v54 = vld [vmem:[%s5074_s9 + $0x26c] ss:$28 sps:$4 sm:$0xff]  }
 0x387   :  { %2661 = vmatpush1.bf16.msra.mxu1 %v3486_v53  ;;  %v3501_v53 = vld [vmem:[%s5074_s9 + $0x2a0] ss:$28 sps:$4 sm:$0xff]  }
 0x388   :  { %2662 = vmatprep.subr.bf16.mxu1 %v3494_v56  ;;  %v3515_v56 = vld [vmem:[%s5074_s9 + $0x234] ss:$28 sps:$4 sm:$0xff]  }
 0x38b   :  { %2663 = vmatpush2.bf16.msra.mxu1 %v3492_v55  ;;  %v3507_v55 = vld [vmem:[%s5074_s9 + $0x268] ss:$28 sps:$4 sm:$0xff]  }
 0x38c   :  { %2664 = vmatprep.subr.bf16.mxu1 %v3500_v58  ;;  %v3513_v58 = vld [vmem:[%s5074_s9 + $0x230] ss:$28 sps:$4 sm:$0xff]  }
 0x38f   :  { %2665 = vmatpush2.bf16.msra.mxu1 %v3498_v57  ;;  %v3518_v57 = vld [vmem:[%s5074_s9 + $0x5ec] ss:$28 sps:$4 sm:$0xff]  }
 0x390   :  { %2666 = vmatprep.subr.bf16.mxu1 %v3506_v60  ;;  %v3521_v60 = vld [vmem:[%s5074_s9 + $0x1fc] ss:$28 sps:$4 sm:$0xff]  }
 0x393   :  { %2667 = vmatpush2.bf16.msra.mxu1 %v3504_v59  ;;  %v3516_v59 = vld [vmem:[%s5074_s9 + $0x5e8] ss:$28 sps:$4 sm:$0xff]  }
 0x394   :  { %2668 = vmatprep.subr.bf16.mxu1 %v3512_v1  ;;  %v3519_v1 = vld [vmem:[%s5074_s9 + $0x1f8] ss:$28 sps:$4 sm:$0xff]  }
 0x397   :  { %2669 = vmatpush2.bf16.msra.mxu1 %v3510_v61  ;;  %v3524_v61 = vld [vmem:[%s5074_s9 + $0x5b4] ss:$28 sps:$4 sm:$0xff]  }
 0x398   :  { %2670 = vmatprep.subr.bf16.mxu1 %v3518_v57  ;;  %v3555_v57 = vld [vmem:[%s5074_s9 + $0xb0] ss:$28 sps:$4 sm:$0xff]  }
 0x39b   :  { %2671 = vmatpush2.bf16.msra.mxu1 %v3516_v59  ;;  %v3563_v59 = vld [vmem:[%s5074_s9 + $0x7c] ss:$28 sps:$4 sm:$0xff]  }
 0x39c   :  { %2672 = vmatprep.subr.bf16.mxu1 %v3524_v61  ;;  %v3561_v61 = vld [vmem:[%s5074_s9 + $0x78] ss:$28 sps:$4 sm:$0xff]  }
 0x428   :  { %v3293_v3 = vpop.f32.mrf.mxu0 }
 0x42a   :  { %v3328_v4 = vpop.f32.mrf.mxu1  ;;  %v3294_v5 = vpop.f32.mrf.mxu0 }
 0x42b   :  { %v3295_v6 = vadd.f32 %v3294_v5, %v3293_v3  ;;  %v3522_v3 = vld [vmem:[%s5074_s9 + $0x5b0] ss:$28 sps:$4 sm:$0xff]   ;;  %v3530_v5 = vld [vmem:[%s5074_s9 + $0x57c] ss:$28 sps:$4 sm:$0xff]  }
 0x42c   :  { %v3329_v7 = vpop.f32.mrf.mxu1  ;;  %2673 = vmatpush2.bf16.msra.mxu1 %v3522_v3  ;;  %v3569_v3 = vld [vmem:[%s5074_s9 + $0x44] ss:$28 sps:$4 sm:$0xff]  }
 0x42d   :  { %v3330_v8 = vadd.f32 %v3329_v7, %v3328_v4  ;;  %v3527_v4 = vld [vmem:[%s5074_s9 + $0x1c4] ss:$28 sps:$4 sm:$0xff]   ;;  %v3528_v7 = vld [vmem:[%s5074_s9 + $0x578] ss:$28 sps:$4 sm:$0xff]   ;;  %2674 = vmatprep.subr.bf16.mxu1 %v3530_v5 }
 0x42e   :  { %v3567_v5 = vld [vmem:[%s5074_s9 + $0x40] ss:$28 sps:$4 sm:$0xff]  }
 0x42f   :  { %v931_v9 = vadd.f32 %v3330_v8, %v3295_v6  ;;  %v3525_v6 = vld [vmem:[%s5074_s9 + $0x1c0] ss:$28 sps:$4 sm:$0xff]  }
 0x430   :  { %2675 = vmatpush2.bf16.msra.mxu1 %v3528_v7  ;;  %v3533_v8 = vld [vmem:[%s5074_s9 + $0x544] ss:$28 sps:$4 sm:$0xff]   ;;  %v3575_v7 = vld [vmem:[%s5074_s9 + $0xc] ss:$28 sps:$4 sm:$0xff]  }
 0x431   :  { %v934_v10 = vmul.f32 0.5, %v931_v9  ;;  %v3536_v9 = vld [vmem:[%s5074_s9 + $0x194] ss:$28 sps:$4 sm:$0xff]   ;;  %2676 = vmatprep.subr.bf16.mxu1 %v3533_v8  ;;  %v3578_v8 = vld [vmem:[%s5074_s9 + $0x3c4] ss:$28 sps:$4 sm:$0xff]  }
 0x433   :  { %v935_v11 = vmul.f32 %v934_v10, %v934_v10 }
 0x435   :  { %v937_v12 = vrot.slane %v935_v11, 7  ;;  %v3542_v11 = vld [vmem:[%s5074_s9 + $0x514] ss:$28 sps:$4 sm:$0xff]  }
 0x437   :  { %v939_v13 = vsub.f32 %v934_v10, %v937_v12 }
 0x439   :  { %v940_v14 = vmax.f32 %v939_v13, 0.0 }
 0x43b   :  { %v941_v15 = vadd.f32 1e-05, %v940_v14 }
 0x43d   :  { %3760 = vrsqrt.f32 %v941_v15 }
 0x44a   :  { %v3761_v26 = vpop.eup %3760 }
 0x44b   :  { %v947_v18 = vmul.f32 %v3761_v26, %v945_v17 }
 0x44d   :  { %v950_v20 = vrot.slane %v947_v18, 1 }
 0x44f   :  { %v952_v22 = vmul.f32 %v950_v20, %v934_v10  ;;  %v3531_v10 = vld [vmem:[%s5074_s9 + $0x540] ss:$28 sps:$4 sm:$0xff]  }
 0x450   :  { %2677 = vmatpush2.bf16.msra.mxu1 %v3531_v10  ;;  %v3576_v10 = vld [vmem:[%s5074_s9 + $0x3c0] ss:$28 sps:$4 sm:$0xff]  }
 0x451   :  { %v953_v23 = vsub.f32 %v948_v21, %v952_v22  ;;  %2728 = vmatprep.subr.bf16.mxu1 %v3542_v11  ;;  %v3581_v11 = vld [vmem:[%s5074_s9 + $0x354] ss:$28 sps:$4 sm:$0xff]  }
 0x453   :  { %v955_v24 = vrot.slane %v953_v23, 7 }
 0x455   :  { %v957_v31 = vsel %vm142_vm3, %v950_v20, %v955_v24 }
 0x456   :  { %3035 = vmatmul.mubr.msk.f32.vlgmr.msra.gmra.mxu0 %vm962_vm5, %v957_v31 }
 0x457   :  { %1068 = vmatpush1.msra.mxu0 %v960_v25  ;;  %1101 = vmatprep.mubr.f32.mxu0 %v3777_v2  ;;  %v3449_v2 = vld [vmem:[%s5074_s9 + $0x11c] ss:$28 sps:$4 sm:$0xff]  }
 0x458   :  { %2605 = vmatprep.subr.bf16.mxu0 %v3440_v29 }
 0x45a   :  { %3036 = vmatmul.mubr.msk.f32.vlgmr.msra.gmra.mxu0 %vm962_vm5, %v957_v31 }
 0x45b   :  { %2606 = vmatpush1.bf16.msra.mxu0 %v3438_v32 }
 0x45c   :  { %2607 = vmatprep.subr.bf16.mxu0 %v3443_v33 }
 0x45f   :  { %2608 = vmatpush1.bf16.msra.mxu0 %v3441_v34 }
 0x460   :  { %2609 = vmatprep.subr.bf16.mxu0 %v3449_v2 }
 0x463   :  { %2610 = vmatpush1.bf16.msra.mxu0 %v3447_v35 }
 0x464   :  { %2611 = vmatprep.subr.bf16.mxu0 %v3455_v36 }
 0x467   :  { %2612 = vmatpush1.bf16.msra.mxu0 %v3453_v37 }
 0x468   :  { %2613 = vmatprep.subr.bf16.mxu0 %v3461_v38 }
 0x46b   :  { %2614 = vmatpush1.bf16.msra.mxu0 %v3459_v39 }
 0x46c   :  { %2615 = vmatprep.subr.bf16.mxu0 %v3467_v40  ;;  %v3534_v40 = vld [vmem:[%s5074_s9 + $0x190] ss:$28 sps:$4 sm:$0xff]  }
 0x46f   :  { %2616 = vmatpush1.bf16.msra.mxu0 %v3465_v41 }
 0x470   :  { %2617 = vmatprep.subr.bf16.mxu0 %v3473_v42 }
 0x473   :  { %2618 = vmatpush1.bf16.msra.mxu0 %v3471_v43 }
 0x474   :  { %2619 = vmatprep.subr.bf16.mxu0 %v3479_v44  ;;  %v3537_v44 = vld [vmem:[%s5074_s9 + $0x158] ss:$28 sps:$4 sm:$0xff]  }
 0x477   :  { %2620 = vmatpush1.bf16.msra.mxu0 %v3477_v45  ;;  %v3540_v45 = vld [vmem:[%s5074_s9 + $0x510] ss:$28 sps:$4 sm:$0xff]  }
 0x478   :  { %2621 = vmatprep.subr.bf16.mxu0 %v3485_v46 }
 0x47b   :  { %2622 = vmatpush2.bf16.msra.mxu0 %v3483_v47  ;;  %v3545_v47 = vld [vmem:[%s5074_s9 + $0x124] ss:$28 sps:$4 sm:$0xff]  }
 0x47c   :  { %2623 = vmatprep.subr.bf16.mxu0 %v3491_v48  ;;  %v3548_v48 = vld [vmem:[%s5074_s9 + $0x4dc] ss:$28 sps:$4 sm:$0xff]  }
 0x47f   :  { %2624 = vmatpush2.bf16.msra.mxu0 %v3489_v49  ;;  %v3543_v49 = vld [vmem:[%s5074_s9 + $0x120] ss:$28 sps:$4 sm:$0xff]  }
 0x480   :  { %2625 = vmatprep.subr.bf16.mxu0 %v3497_v50  ;;  %v3546_v50 = vld [vmem:[%s5074_s9 + $0x4d8] ss:$28 sps:$4 sm:$0xff]  }
 0x483   :  { %2626 = vmatpush2.bf16.msra.mxu0 %v3495_v51  ;;  %v3551_v51 = vld [vmem:[%s5074_s9 + $0xec] ss:$28 sps:$4 sm:$0xff]  }
 0x484   :  { %2627 = vmatprep.subr.bf16.mxu0 %v3503_v52  ;;  %v3554_v52 = vld [vmem:[%s5074_s9 + $0x4a4] ss:$28 sps:$4 sm:$0xff]  }
 0x487   :  { %2628 = vmatpush2.bf16.msra.mxu0 %v3501_v53  ;;  %v3549_v53 = vld [vmem:[%s5074_s9 + $0xe8] ss:$28 sps:$4 sm:$0xff]  }
 0x488   :  { %2629 = vmatprep.subr.bf16.mxu0 %v3509_v54  ;;  %v3552_v54 = vld [vmem:[%s5074_s9 + $0x4a0] ss:$28 sps:$4 sm:$0xff]  }
 0x48b   :  { %2630 = vmatpush2.bf16.msra.mxu0 %v3507_v55  ;;  %v3557_v55 = vld [vmem:[%s5074_s9 + $0xb4] ss:$28 sps:$4 sm:$0xff]  }
 0x48c   :  { %2631 = vmatprep.subr.bf16.mxu0 %v3515_v56  ;;  %v3560_v56 = vld [vmem:[%s5074_s9 + $0x46c] ss:$28 sps:$4 sm:$0xff]  }
 0x48f   :  { %2632 = vmatpush2.bf16.msra.mxu0 %v3513_v58  ;;  %v3558_v58 = vld [vmem:[%s5074_s9 + $0x468] ss:$28 sps:$4 sm:$0xff]  }
 0x490   :  { %2633 = vmatprep.subr.bf16.mxu0 %v3521_v60  ;;  %v3566_v60 = vld [vmem:[%s5074_s9 + $0x434] ss:$28 sps:$4 sm:$0xff]  }
 0x493   :  { %2634 = vmatpush2.bf16.msra.mxu0 %v3519_v1  ;;  %v3564_v1 = vld [vmem:[%s5074_s9 + $0x430] ss:$28 sps:$4 sm:$0xff]  }
 0x494   :  { %2635 = vmatprep.subr.bf16.mxu0 %v3527_v4  ;;  %v3572_v4 = vld [vmem:[%s5074_s9 + $0x3fc] ss:$28 sps:$4 sm:$0xff]  }
 0x497   :  { %2636 = vmatpush2.bf16.msra.mxu0 %v3525_v6  ;;  %v3570_v6 = vld [vmem:[%s5074_s9 + $0x3f8] ss:$28 sps:$4 sm:$0xff]  }
 0x498   :  { %2687 = vmatprep.subr.bf16.mxu0 %v3536_v9  ;;  %v3573_v9 = vld [vmem:[%s5074_s9 + $0x8] ss:$28 sps:$4 sm:$0xff]  }
 0x516   :  { %v1032_v12 = vpop.f32.mrf.mxu0 }
 0x517   :  { %v1111_v13 = vrot.slane %v1032_v12, %v4079_v63  ;;  %v1131_v16 = vrot.slane %v1032_v12, %v4082_v0  ;;  %v3584_v12 = vld [vmem:[%s5074_s9 + $0x38c] ss:$28 sps:$4 sm:$0xff]  }
 0x518   :  { %v1034_v14 = vpop.f32.mrf.mxu0 }
 0x519   :  { %v1124_v15 = vmul.f32 %v1111_v13, %v4278_v30  ;;  %v1115_v17 = vrot.slane %v1034_v14, %v4079_v63  ;;  %v1135_v21 = vrot.slane %v1034_v14, %v4082_v0  ;;  %v3579_v13 = vld [vmem:[%s5074_s9 + $0x350] ss:$28 sps:$4 sm:$0xff]   ;;  %v3582_v14 = vld [vmem:[%s5074_s9 + $0x388] ss:$28 sps:$4 sm:$0xff]  }
 0x51a   :  { %v1103_v26 = vpop.f32.mrf.mxu0 }
 0x51b   :  { %v1144_v18 = vadd.f32 %v1131_v16, %v1124_v15  ;;  %v1125_v20 = vmul.f32 %v1115_v17, %v4290_v27  ;;  %v1119_v22 = vrot.slane %v1103_v26, %v4079_v63  ;;  %v1139_v23 = vrot.slane %v1103_v26, %v4082_v0  ;;  %v3587_v15 = vld [vmem:[%s5074_s9 + $0x31c] ss:$28 sps:$4 sm:$0xff]   ;;  %v3590_v16 = vld [vmem:[%s5074_s9 + $0x6d4] ss:$28 sps:$4 sm:$0xff]  }
 0x51c   :  { %v1105_v24 = vpop.f32.mrf.mxu0  ;;  %v3585_v17 = vld [vmem:[%s5074_s9 + $0x318] ss:$28 sps:$4 sm:$0xff]   ;;  %v3588_v26 = vld [vmem:[%s5074_s9 + $0x6d0] ss:$28 sps:$4 sm:$0xff]  }
 0x51d   :  { %v1148_v25 = vmul.f32 0.2, %v1144_v18  ;;  %v1145_v29 = vadd.f32 %v1135_v21, %v1125_v20  ;;  %v1126_v31 = vmul.f32 %v1119_v22, %v4280_v19  ;;  %v1123_v30 = vrot.slane %v1105_v24, %v4079_v63  ;;  %v3596_v20 = vld [vmem:[%s5074_s9 + $0x69c] ss:$28 sps:$4 sm:$0xff]  }
 0x51e   :  { %v1143_v2 = vrot.slane %v1105_v24, %v4082_v0  ;;  %v3591_v21 = vld [vmem:[%s5074_s9 + $0x2e0] ss:$28 sps:$4 sm:$0xff]   ;;  %v3594_v22 = vld [vmem:[%s5074_s9 + $0x698] ss:$28 sps:$4 sm:$0xff]  }
 0x51f   :  { %v1149_v32 = vmul.f32 0.2, %v1145_v29  ;;  %v1146_v33 = vadd.f32 %v1139_v23, %v1126_v31  ;;  %v1127_v34 = vmul.f32 %v1123_v30, %v4292_v28  ;;  %v1152_v27 = vmax.f32 %v1144_v18, %v1148_v25  ;;  %v3539_v28 = vld [vmem:[%s5074_s9 + $0x15c] ss:$28 sps:$4 sm:$0xff]   ;;  %v3593_v18 = vld [vmem:[%s5074_s9 + $0x2e4] ss:$28 sps:$4 sm:$0xff]  }
 0x520   :  { %v3599_v23 = vld [vmem:[%s5074_s9 + $0x2ac] ss:$28 sps:$4 sm:$0xff]   ;;  %v3602_v24 = vld [vmem:[%s5074_s9 + $0x664] ss:$28 sps:$4 sm:$0xff]   ;;  %v3605_v31 = vld [vmem:[%s5074_s9 + $0x274] ss:$28 sps:$4 sm:$0xff]  }
 0x521   :  { %v1153_v35 = vmax.f32 %v1145_v29, %v1149_v32  ;;  %v1150_v36 = vmul.f32 0.2, %v1146_v33  ;;  %v1147_v37 = vadd.f32 %v1143_v2, %v1127_v34  ;;  %v4546_v19 = vpack.c.bf16 %v1152_v27, %v1152_v27  ;;  %v3597_v25 = vld [vmem:[%s5074_s9 + $0x2a8] ss:$28 sps:$4 sm:$0xff]   ;;  %v3600_v29 = vld [vmem:[%s5074_s9 + $0x660] ss:$28 sps:$4 sm:$0xff]  }
 0x522   :  { %v3608_v30 = vld [vmem:[%s5074_s9 + $0x62c] ss:$28 sps:$4 sm:$0xff]   ;;  %v3611_v34 = vld [vmem:[%s5074_s9 + $0x23c] ss:$28 sps:$4 sm:$0xff]   ;;  %v3614_v2 = vld [vmem:[%s5074_s9 + $0x5f4] ss:$28 sps:$4 sm:$0xff]  }
 0x523   :  { %v4541_v38 = vpack.c.bf16 %v1153_v35, %v1153_v35  ;;  %v1151_v39 = vmul.f32 0.2, %v1147_v37  ;;  %v1154_v41 = vmax.f32 %v1146_v33, %v1150_v36  ;;  %v3603_v32 = vld [vmem:[%s5074_s9 + $0x270] ss:$28 sps:$4 sm:$0xff]   ;;  %v3606_v33 = vld [vmem:[%s5074_s9 + $0x628] ss:$28 sps:$4 sm:$0xff]  }
 0x524   :  { %v3609_v27 = vld [vmem:[%s5074_s9 + $0x238] ss:$28 sps:$4 sm:$0xff]   ;;  %v3612_v35 = vld [vmem:[%s5074_s9 + $0x5f0] ss:$28 sps:$4 sm:$0xff]   ;;  %v3617_v36 = vld [vmem:[%s5074_s9 + $0x204] ss:$28 sps:$4 sm:$0xff]  }
 0x525   :  { %v1155_v42 = vmax.f32 %v1147_v37, %v1151_v39  ;;  %2637 = vmatprep.mubr.bf16.mxu0 %v4541_v38  ;;  %v4562_v46 = vpack.c.bf16 %v1154_v41, %v1154_v41  ;;  %v3620_v37 = vld [vmem:[%s5074_s9 + $0x5bc] ss:$28 sps:$4 sm:$0xff]   ;;  %v3623_v41 = vld [vmem:[%s5074_s9 + $0x1cc] ss:$28 sps:$4 sm:$0xff]  }
 0x526   :  { %2638 = vmatmul.mubr.bf16.vlgmr.msra.gmra.mxu0 %v4546_v19  ;;  %v3615_v39 = vld [vmem:[%s5074_s9 + $0x200] ss:$28 sps:$4 sm:$0xff]  }
 0x527   :  { %v4553_v43 = vpack.c.bf16 %v1155_v42, %v1155_v42  ;;  %2688 = vmatpush1.bf16.msra.mxu0 %v3534_v40  ;;  %2719 = vmatprep.mubr.bf16.mxu0 %v4541_v38  ;;  %v3618_v40 = vld [vmem:[%s5074_s9 + $0x5b8] ss:$28 sps:$4 sm:$0xff]   ;;  %v3621_v42 = vld [vmem:[%s5074_s9 + $0x1c8] ss:$28 sps:$4 sm:$0xff]  }
 0x528   :  { %2689 = vmatprep.subr.bf16.mxu0 %v3539_v28  ;;  %v3626_v28 = vld [vmem:[%s5074_s9 + $0x584] ss:$28 sps:$4 sm:$0xff]  }
 0x529   :  { %2678 = vmatprep.mubr.bf16.mxu1 %v4553_v43 }
 0x52a   :  { %2679 = vmatmul.mubr.bf16.vlgmr.msra.gmra.mxu1 %v4562_v46 }
 0x52b   :  { %2690 = vmatpush1.bf16.msra.mxu0 %v3537_v44  ;;  %2729 = vmatpush1.bf16.msra.mxu1 %v3540_v45  ;;  %v3624_v44 = vld [vmem:[%s5074_s9 + $0x580] ss:$28 sps:$4 sm:$0xff]   ;;  %v3629_v45 = vld [vmem:[%s5074_s9 + $0x54c] ss:$28 sps:$4 sm:$0xff]  }
 0x52c   :  { %2760 = vmatprep.mubr.bf16.mxu1 %v4553_v43  ;;  %2691 = vmatprep.subr.bf16.mxu0 %v3545_v47  ;;  %v3632_v47 = vld [vmem:[%s5074_s9 + $0x19c] ss:$28 sps:$4 sm:$0xff]  }
 0x52d   :  { %2730 = vmatprep.subr.bf16.mxu1 %v3548_v48  ;;  %v3627_v48 = vld [vmem:[%s5074_s9 + $0x548] ss:$28 sps:$4 sm:$0xff]  }
 0x52f   :  { %2692 = vmatpush1.bf16.msra.mxu0 %v3543_v49  ;;  %2731 = vmatpush1.bf16.msra.mxu1 %v3546_v50  ;;  %v3630_v49 = vld [vmem:[%s5074_s9 + $0x198] ss:$28 sps:$4 sm:$0xff]   ;;  %v3635_v50 = vld [vmem:[%s5074_s9 + $0x164] ss:$28 sps:$4 sm:$0xff]  }
 0x530   :  { %2693 = vmatprep.subr.bf16.mxu0 %v3551_v51  ;;  %2732 = vmatprep.subr.bf16.mxu1 %v3554_v52  ;;  %v3638_v51 = vld [vmem:[%s5074_s9 + $0x51c] ss:$28 sps:$4 sm:$0xff]  }
 0x531   :  { %v3633_v52 = vld [vmem:[%s5074_s9 + $0x160] ss:$28 sps:$4 sm:$0xff]  }
 0x533   :  { %2694 = vmatpush1.bf16.msra.mxu0 %v3549_v53  ;;  %2733 = vmatpush1.bf16.msra.mxu1 %v3552_v54  ;;  %v3636_v53 = vld [vmem:[%s5074_s9 + $0x518] ss:$28 sps:$4 sm:$0xff]   ;;  %v3641_v54 = vld [vmem:[%s5074_s9 + $0x12c] ss:$28 sps:$4 sm:$0xff]  }
 0x534   :  { %2695 = vmatprep.subr.bf16.mxu0 %v3557_v55  ;;  %2734 = vmatprep.subr.bf16.mxu1 %v3560_v56  ;;  %v3644_v55 = vld [vmem:[%s5074_s9 + $0x4e4] ss:$28 sps:$4 sm:$0xff]  }
 0x535   :  { %v3639_v56 = vld [vmem:[%s5074_s9 + $0x128] ss:$28 sps:$4 sm:$0xff]  }
 0x537   :  { %2696 = vmatpush1.bf16.msra.mxu0 %v3555_v57  ;;  %2735 = vmatpush1.bf16.msra.mxu1 %v3558_v58  ;;  %v3642_v57 = vld [vmem:[%s5074_s9 + $0x4e0] ss:$28 sps:$4 sm:$0xff]   ;;  %v3647_v58 = vld [vmem:[%s5074_s9 + $0xf4] ss:$28 sps:$4 sm:$0xff]  }
 0x538   :  { %2697 = vmatprep.subr.bf16.mxu0 %v3563_v59  ;;  %2736 = vmatprep.subr.bf16.mxu1 %v3566_v60  ;;  %v3650_v59 = vld [vmem:[%s5074_s9 + $0x4ac] ss:$28 sps:$4 sm:$0xff]  }
 0x539   :  { %v3645_v60 = vld [vmem:[%s5074_s9 + $0xf0] ss:$28 sps:$4 sm:$0xff]  }
 0x53b   :  { %2698 = vmatpush1.bf16.msra.mxu0 %v3561_v61  ;;  %2737 = vmatpush1.bf16.msra.mxu1 %v3564_v1  ;;  %v3648_v61 = vld [vmem:[%s5074_s9 + $0x4a8] ss:$28 sps:$4 sm:$0xff]   ;;  %v3653_v1 = vld [vmem:[%s5074_s9 + $0xbc] ss:$28 sps:$4 sm:$0xff]  }
 0x53c   :  { %2699 = vmatprep.subr.bf16.mxu0 %v3569_v3  ;;  %2738 = vmatprep.subr.bf16.mxu1 %v3572_v4  ;;  %v3656_v3 = vld [vmem:[%s5074_s9 + $0x474] ss:$28 sps:$4 sm:$0xff]  }
 0x53d   :  { %v3651_v4 = vld [vmem:[%s5074_s9 + $0xb8] ss:$28 sps:$4 sm:$0xff]  }
 0x53f   :  { %2700 = vmatpush1.bf16.msra.mxu0 %v3567_v5  ;;  %2739 = vmatpush1.bf16.msra.mxu1 %v3570_v6  ;;  %v3654_v5 = vld [vmem:[%s5074_s9 + $0x470] ss:$28 sps:$4 sm:$0xff]   ;;  %v3659_v6 = vld [vmem:[%s5074_s9 + $0x84] ss:$28 sps:$4 sm:$0xff]  }
 0x540   :  { %2701 = vmatprep.subr.bf16.mxu0 %v3575_v7  ;;  %2740 = vmatprep.subr.bf16.mxu1 %v3578_v8  ;;  %v3662_v7 = vld [vmem:[%s5074_s9 + $0x43c] ss:$28 sps:$4 sm:$0xff]  }
 0x541   :  { %v3657_v8 = vld [vmem:[%s5074_s9 + $0x80] ss:$28 sps:$4 sm:$0xff]  }
 0x543   :  { %2702 = vmatpush1.bf16.msra.mxu0 %v3573_v9  ;;  %2741 = vmatpush1.bf16.msra.mxu1 %v3576_v10  ;;  %v3660_v9 = vld [vmem:[%s5074_s9 + $0x438] ss:$28 sps:$4 sm:$0xff]   ;;  %v3665_v10 = vld [vmem:[%s5074_s9 + $0x4c] ss:$28 sps:$4 sm:$0xff]  }
 0x544   :  { %2703 = vmatprep.subr.bf16.mxu0 %v3581_v11  ;;  %2742 = vmatprep.subr.bf16.mxu1 %v3584_v12  ;;  %v3668_v11 = vld [vmem:[%s5074_s9 + $0x404] ss:$28 sps:$4 sm:$0xff]  }
 0x545   :  { %v3663_v12 = vld [vmem:[%s5074_s9 + $0x48] ss:$28 sps:$4 sm:$0xff]  }
 0x547   :  { %2704 = vmatpush2.bf16.msra.mxu0 %v3579_v13  ;;  %2743 = vmatpush1.bf16.msra.mxu1 %v3582_v14  ;;  %v3666_v13 = vld [vmem:[%s5074_s9 + $0x400] ss:$28 sps:$4 sm:$0xff]   ;;  %v3671_v14 = vld [vmem:[%s5074_s9 + $0x14] ss:$28 sps:$4 sm:$0xff]  }
 0x548   :  { %2705 = vmatprep.subr.bf16.mxu0 %v3587_v15  ;;  %2744 = vmatprep.subr.bf16.mxu1 %v3590_v16  ;;  %v3674_v15 = vld [vmem:[%s5074_s9 + $0x3cc] ss:$28 sps:$4 sm:$0xff]  }
 0x549   :  { %v3669_v16 = vld [vmem:[%s5074_s9 + $0x10] ss:$28 sps:$4 sm:$0xff]  }
 0x54b   :  { %2706 = vmatpush2.bf16.msra.mxu0 %v3585_v17  ;;  %2745 = vmatpush2.bf16.msra.mxu1 %v3588_v26  ;;  %v3672_v17 = vld [vmem:[%s5074_s9 + $0x3c8] ss:$28 sps:$4 sm:$0xff]   ;;  %v3677_v26 = vld [vmem:[%s5074_s9 + $0x35c] ss:$28 sps:$4 sm:$0xff]  }
 0x54c   :  { %2707 = vmatprep.subr.bf16.mxu0 %v3593_v18  ;;  %2746 = vmatprep.subr.bf16.mxu1 %v3596_v20  ;;  %v3680_v18 = vld [vmem:[%s5074_s9 + $0x394] ss:$28 sps:$4 sm:$0xff]  }
 0x54d   :  { %v3675_v20 = vld [vmem:[%s5074_s9 + $0x358] ss:$28 sps:$4 sm:$0xff]  }
 0x54f   :  { %2708 = vmatpush2.bf16.msra.mxu0 %v3591_v21  ;;  %2747 = vmatpush2.bf16.msra.mxu1 %v3594_v22  ;;  %v3678_v21 = vld [vmem:[%s5074_s9 + $0x390] ss:$28 sps:$4 sm:$0xff]   ;;  %v3683_v22 = vld [vmem:[%s5074_s9 + $0x324] ss:$28 sps:$4 sm:$0xff]  }
 0x550   :  { %2709 = vmatprep.subr.bf16.mxu0 %v3599_v23  ;;  %2748 = vmatprep.subr.bf16.mxu1 %v3602_v24  ;;  %v3686_v23 = vld [vmem:[%s5074_s9 + $0x6dc] ss:$28 sps:$4 sm:$0xff]  }
 0x551   :  { %v3681_v24 = vld [vmem:[%s5074_s9 + $0x320] ss:$28 sps:$4 sm:$0xff]  }
 0x553   :  { %2710 = vmatpush2.bf16.msra.mxu0 %v3597_v25  ;;  %2749 = vmatpush2.bf16.msra.mxu1 %v3600_v29  ;;  %v3684_v25 = vld [vmem:[%s5074_s9 + $0x6d8] ss:$28 sps:$4 sm:$0xff]   ;;  %v3689_v29 = vld [vmem:[%s5074_s9 + $0x2ec] ss:$28 sps:$4 sm:$0xff]  }
 0x554   :  { %2711 = vmatprep.subr.bf16.mxu0 %v3605_v31  ;;  %2750 = vmatprep.subr.bf16.mxu1 %v3608_v30  ;;  %v3692_v31 = vld [vmem:[%s5074_s9 + $0x6a4] ss:$28 sps:$4 sm:$0xff]  }
 0x555   :  { %v3687_v30 = vld [vmem:[%s5074_s9 + $0x2e8] ss:$28 sps:$4 sm:$0xff]  }
 0x557   :  { %2712 = vmatpush2.bf16.msra.mxu0 %v3603_v32  ;;  %2751 = vmatpush2.bf16.msra.mxu1 %v3606_v33  ;;  %v3690_v32 = vld [vmem:[%s5074_s9 + $0x6a0] ss:$28 sps:$4 sm:$0xff]   ;;  %v3695_v33 = vld [vmem:[%s5074_s9 + $0x2b4] ss:$28 sps:$4 sm:$0xff]  }
 0x558   :  { %2713 = vmatprep.subr.bf16.mxu0 %v3611_v34  ;;  %2752 = vmatprep.subr.bf16.mxu1 %v3614_v2  ;;  %v3698_v34 = vld [vmem:[%s5074_s9 + $0x66c] ss:$28 sps:$4 sm:$0xff]  }
 0x559   :  { %v3693_v2 = vld [vmem:[%s5074_s9 + $0x2b0] ss:$28 sps:$4 sm:$0xff]  }
 0x55b   :  { %2714 = vmatpush2.bf16.msra.mxu0 %v3609_v27  ;;  %2753 = vmatpush2.bf16.msra.mxu1 %v3612_v35  ;;  %v3696_v27 = vld [vmem:[%s5074_s9 + $0x668] ss:$28 sps:$4 sm:$0xff]   ;;  %v3701_v35 = vld [vmem:[%s5074_s9 + $0x27c] ss:$28 sps:$4 sm:$0xff]  }
 0x55c   :  { %2715 = vmatprep.subr.bf16.mxu0 %v3617_v36  ;;  %2754 = vmatprep.subr.bf16.mxu1 %v3620_v37  ;;  %v3704_v36 = vld [vmem:[%s5074_s9 + $0x634] ss:$28 sps:$4 sm:$0xff]  }
 0x55d   :  { %v3699_v37 = vld [vmem:[%s5074_s9 + $0x278] ss:$28 sps:$4 sm:$0xff]  }
 0x55f   :  { %2716 = vmatpush2.bf16.msra.mxu0 %v3615_v39  ;;  %2755 = vmatpush2.bf16.msra.mxu1 %v3618_v40  ;;  %v3702_v39 = vld [vmem:[%s5074_s9 + $0x630] ss:$28 sps:$4 sm:$0xff]   ;;  %v3707_v40 = vld [vmem:[%s5074_s9 + $0x244] ss:$28 sps:$4 sm:$0xff]  }
 0x560   :  { %2717 = vmatprep.subr.bf16.mxu0 %v3623_v41  ;;  %2756 = vmatprep.subr.bf16.mxu1 %v3626_v28  ;;  %v3710_v41 = vld [vmem:[%s5074_s9 + $0x5fc] ss:$28 sps:$4 sm:$0xff]  }
 0x561   :  { %v3705_v28 = vld [vmem:[%s5074_s9 + $0x240] ss:$28 sps:$4 sm:$0xff]  }
 0x563   :  { %2718 = vmatpush2.bf16.msra.mxu0 %v3621_v42  ;;  %2757 = vmatpush2.bf16.msra.mxu1 %v3624_v44  ;;  %v3708_v42 = vld [vmem:[%s5074_s9 + $0x5f8] ss:$28 sps:$4 sm:$0xff]   ;;  %v3713_v44 = vld [vmem:[%s5074_s9 + $0x20c] ss:$28 sps:$4 sm:$0xff]  }
 0x564   :  { %2758 = vmatprep.subr.bf16.mxu1 %v3629_v45  ;;  %2769 = vmatprep.subr.bf16.mxu0 %v3632_v47  ;;  %v3716_v45 = vld [vmem:[%s5074_s9 + $0x5c4] ss:$28 sps:$4 sm:$0xff]  }
 0x565   :  { %v3711_v47 = vld [vmem:[%s5074_s9 + $0x208] ss:$28 sps:$4 sm:$0xff]  }
 0x566   :  { %2720 = vmatmul.mubr.bf16.vlgmr.msra.gmra.mxu0 %v4546_v19 }
 0x567   :  { %2759 = vmatpush2.bf16.msra.mxu1 %v3627_v48  ;;  %2770 = vmatpush1.bf16.msra.mxu0 %v3630_v49  ;;  %v3714_v48 = vld [vmem:[%s5074_s9 + $0x5c0] ss:$28 sps:$4 sm:$0xff]   ;;  %v3719_v49 = vld [vmem:[%s5074_s9 + $0x1d4] ss:$28 sps:$4 sm:$0xff]  }
 0x568   :  { %2801 = vmatprep.mubr.bf16.mxu0 %v4541_v38  ;;  %2771 = vmatprep.subr.bf16.mxu0 %v3635_v50  ;;  %v3722_v50 = vld [vmem:[%s5074_s9 + $0x58c] ss:$28 sps:$4 sm:$0xff]  }
 0x569   :  { %2810 = vmatprep.subr.bf16.mxu1 %v3638_v51  ;;  %v3717_v51 = vld [vmem:[%s5074_s9 + $0x1d0] ss:$28 sps:$4 sm:$0xff]  }
 0x56a   :  { %2761 = vmatmul.mubr.bf16.vlgmr.msra.gmra.mxu1 %v4562_v46 }
 0x56b   :  { %2772 = vmatpush1.bf16.msra.mxu0 %v3633_v52  ;;  %2811 = vmatpush1.bf16.msra.mxu1 %v3636_v53  ;;  %v3720_v52 = vld [vmem:[%s5074_s9 + $0x588] ss:$28 sps:$4 sm:$0xff]   ;;  %v3725_v53 = vld [vmem:[%s5074_s9 + $0x554] ss:$28 sps:$4 sm:$0xff]  }
 0x56c   :  { %2842 = vmatprep.mubr.bf16.mxu1 %v4553_v43  ;;  %2773 = vmatprep.subr.bf16.mxu0 %v3641_v54  ;;  %v3726_v54 = vld [vmem:[%s5074_s9 + $0x360] ss:$28 sps:$4 sm:$0xff]  }
 0x56d   :  { %2812 = vmatprep.subr.bf16.mxu1 %v3644_v55  ;;  %v3723_v55 = vld [vmem:[%s5074_s9 + $0x550] ss:$28 sps:$4 sm:$0xff]  }
 0x56f   :  { %2774 = vmatpush1.bf16.msra.mxu0 %v3639_v56  ;;  %2813 = vmatpush1.bf16.msra.mxu1 %v3642_v57  ;;  %v3727_v56 = vld [vmem:[%s5074_s9 + $0x1a0] ss:$28 sps:$4 sm:$0xff]   ;;  %v3728_v57 = vld [vmem:[%s5074_s9 + $0x328] ss:$28 sps:$4 sm:$0xff]  }
 0x570   :  { %2775 = vmatprep.subr.bf16.mxu0 %v3647_v58  ;;  %2814 = vmatprep.subr.bf16.mxu1 %v3650_v59  ;;  %v3729_v58 = vld [vmem:[%s5074_s9 + $0x6e0] ss:$28 sps:$4 sm:$0xff]   ;;  %v3730_v59 = vld [vmem:[%s5074_s9 + $0x168] ss:$28 sps:$4 sm:$0xff]  }
 0x573   :  { %2776 = vmatpush1.bf16.msra.mxu0 %v3645_v60  ;;  %2815 = vmatpush1.bf16.msra.mxu1 %v3648_v61  ;;  %v3731_v60 = vld [vmem:[%s5074_s9 + $0x520] ss:$28 sps:$4 sm:$0xff]   ;;  %v3732_v61 = vld [vmem:[%s5074_s9 + $0x2f0] ss:$28 sps:$4 sm:$0xff]  }
 0x574   :  { %2777 = vmatprep.subr.bf16.mxu0 %v3653_v1  ;;  %2816 = vmatprep.subr.bf16.mxu1 %v3656_v3  ;;  %v3733_v1 = vld [vmem:[%s5074_s9 + $0x6a8] ss:$28 sps:$4 sm:$0xff]   ;;  %v3734_v3 = vld [vmem:[%s5074_s9 + $0x130] ss:$28 sps:$4 sm:$0xff]  }
 0x577   :  { %2778 = vmatpush1.bf16.msra.mxu0 %v3651_v4  ;;  %2817 = vmatpush1.bf16.msra.mxu1 %v3654_v5  ;;  %v3736_v4 = vld [vmem:[%s5074_s9 + $0x2b8] ss:$28 sps:$4 sm:$0xff]   ;;  %v3737_v5 = vld [vmem:[%s5074_s9 + $0x670] ss:$28 sps:$4 sm:$0xff]  }
 0x578   :  { %2779 = vmatprep.subr.bf16.mxu0 %v3659_v6  ;;  %2818 = vmatprep.subr.bf16.mxu1 %v3662_v7  ;;  %v3738_v6 = vld [vmem:[%s5074_s9 + $0xf8] ss:$28 sps:$4 sm:$0xff]   ;;  %v3740_v7 = vld [vmem:[%s5074_s9 + $0x280] ss:$28 sps:$4 sm:$0xff]  }
 0x57b   :  { %2780 = vmatpush1.bf16.msra.mxu0 %v3657_v8  ;;  %2819 = vmatpush1.bf16.msra.mxu1 %v3660_v9  ;;  %v3741_v8 = vld [vmem:[%s5074_s9 + $0x638] ss:$28 sps:$4 sm:$0xff]   ;;  %v3742_v9 = vld [vmem:[%s5074_s9 + $0xc0] ss:$28 sps:$4 sm:$0xff]  }
 0x57c   :  { %2781 = vmatprep.subr.bf16.mxu0 %v3665_v10  ;;  %2820 = vmatprep.subr.bf16.mxu1 %v3668_v11  ;;  %v3743_v10 = vld [vmem:[%s5074_s9 + $0x478] ss:$28 sps:$4 sm:$0xff]   ;;  %v3744_v11 = vld [vmem:[%s5074_s9 + $0x248] ss:$28 sps:$4 sm:$0xff]  }
 0x57f   :  { %2782 = vmatpush1.bf16.msra.mxu0 %v3663_v12  ;;  %2821 = vmatpush1.bf16.msra.mxu1 %v3666_v13  ;;  %v3745_v12 = vld [vmem:[%s5074_s9 + $0x600] ss:$28 sps:$4 sm:$0xff]   ;;  %v3746_v13 = vld [vmem:[%s5074_s9 + $0x88] ss:$28 sps:$4 sm:$0xff]  }
 0x580   :  { %2783 = vmatprep.subr.bf16.mxu0 %v3671_v14  ;;  %2822 = vmatprep.subr.bf16.mxu1 %v3674_v15  ;;  %v3747_v14 = vld [vmem:[%s5074_s9 + $0x440] ss:$28 sps:$4 sm:$0xff]   ;;  %v3748_v15 = vld [vmem:[%s5074_s9 + $0x210] ss:$28 sps:$4 sm:$0xff]  }
 0x583   :  { %2784 = vmatpush1.bf16.msra.mxu0 %v3669_v16  ;;  %2823 = vmatpush1.bf16.msra.mxu1 %v3672_v17  ;;  %v3749_v16 = vld [vmem:[%s5074_s9 + $0x5c8] ss:$28 sps:$4 sm:$0xff]   ;;  %v3750_v17 = vld [vmem:[%s5074_s9 + $0x50] ss:$28 sps:$4 sm:$0xff]  }
 0x584   :  { %2785 = vmatprep.subr.bf16.mxu0 %v3677_v26  ;;  %2824 = vmatprep.subr.bf16.mxu1 %v3680_v18  ;;  %v3751_v26 = vld [vmem:[%s5074_s9 + $0x408] ss:$28 sps:$4 sm:$0xff]   ;;  %v3752_v18 = vld [vmem:[%s5074_s9 + $0x1d8] ss:$28 sps:$4 sm:$0xff]  }
 0x587   :  { %2786 = vmatpush2.bf16.msra.mxu0 %v3675_v20  ;;  %2825 = vmatpush1.bf16.msra.mxu1 %v3678_v21  ;;  %v3753_v20 = vld [vmem:[%s5074_s9 + $0x590] ss:$28 sps:$4 sm:$0xff]   ;;  %v3754_v21 = vld [vmem:[%s5074_s9 + $0x18] ss:$28 sps:$4 sm:$0xff]  }
 0x588   :  { %2787 = vmatprep.subr.bf16.mxu0 %v3683_v22  ;;  %2826 = vmatprep.subr.bf16.mxu1 %v3686_v23  ;;  %v3755_v22 = vld [vmem:[%s5074_s9 + $0x3d0] ss:$28 sps:$4 sm:$0xff]   ;;  %v3756_v23 = vld [vmem:[%s5074_s9 + $0x558] ss:$28 sps:$4 sm:$0xff]  }
 0x58b   :  { %2788 = vmatpush2.bf16.msra.mxu0 %v3681_v24  ;;  %2827 = vmatpush2.bf16.msra.mxu1 %v3684_v25  ;;  %v3757_v24 = vld [vmem:[%s5074_s9 + $0x398] ss:$28 sps:$4 sm:$0xff]   ;;  %v5042_v25 = vld [vmem:[%s5076_s10] sm:$0x7f] }
 0x58c   :  { %2789 = vmatprep.subr.bf16.mxu0 %v3689_v29  ;;  %2828 = vmatprep.subr.bf16.mxu1 %v3692_v31  ;;  %v1421_v29 = vrot.slane %v5042_v25, %v4079_v63 }
 0x58f   :  { %2790 = vmatpush2.bf16.msra.mxu0 %v3687_v30  ;;  %2829 = vmatpush2.bf16.msra.mxu1 %v3690_v32  ;;  %v1425_v30 = vrot.slane %v5042_v25, %v4082_v0  ;;  %v1432_v0 = vsub.s32 3, %v4076_v62 }
 0x590   :  { %2791 = vmatprep.subr.bf16.mxu0 %v3695_v33  ;;  %2830 = vmatprep.subr.bf16.mxu1 %v3698_v34 }
 0x593   :  { %2792 = vmatpush2.bf16.msra.mxu0 %v3693_v2  ;;  %2831 = vmatpush2.bf16.msra.mxu1 %v3696_v27 }
 0x594   :  { %2793 = vmatprep.subr.bf16.mxu0 %v3701_v35  ;;  %2832 = vmatprep.subr.bf16.mxu1 %v3704_v36 }
 0x597   :  { %2794 = vmatpush2.bf16.msra.mxu0 %v3699_v37  ;;  %2833 = vmatpush2.bf16.msra.mxu1 %v3702_v39 }
 0x598   :  { %2795 = vmatprep.subr.bf16.mxu0 %v3707_v40  ;;  %2834 = vmatprep.subr.bf16.mxu1 %v3710_v41 }
 0x59b   :  { %2796 = vmatpush2.bf16.msra.mxu0 %v3705_v28  ;;  %2835 = vmatpush2.bf16.msra.mxu1 %v3708_v42  ;;  %v1428_v28 = vsub.s32 2, %v4076_v62 }
 0x59c   :  { %2797 = vmatprep.subr.bf16.mxu0 %v3713_v44  ;;  %2836 = vmatprep.subr.bf16.mxu1 %v3716_v45  ;;  %v1433_v45 = vrot.slane %v5042_v25, %v1432_v0 }
 0x59d   :  { %v1429_v42 = vrot.slane %v5042_v25, %v1428_v28 }
 0x59f   :  { %2798 = vmatpush2.bf16.msra.mxu0 %v3711_v47  ;;  %2837 = vmatpush2.bf16.msra.mxu1 %v3714_v48 }
 0x5a0   :  { %2799 = vmatprep.subr.bf16.mxu0 %v3719_v49  ;;  %2838 = vmatprep.subr.bf16.mxu1 %v3722_v50 }
 0x5a3   :  { %2800 = vmatpush2.bf16.msra.mxu0 %v3717_v51  ;;  %2839 = vmatpush2.bf16.msra.mxu1 %v3720_v52 }
 0x5a4   :  { %2840 = vmatprep.subr.bf16.mxu1 %v3725_v53  ;;  %3331 = vmatprep.subr.bf16.mxu0 %v3726_v54 }
 0x5a6   :  { %2802 = vmatmul.mubr.bf16.vlgmr.msra.gmra.mxu0 %v4546_v19 }
 0x5a7   :  { %2841 = vmatpush2.bf16.msra.mxu1 %v3723_v55  ;;  %3332 = vmatpush3.bf16.msra.mxu0 %v3727_v56 }
 0x5a8   :  { %2883 = vmatprep.mubr.bf16.mxu0 %v4541_v38  ;;  %3333 = vmatprep.subr.bf16.mxu0 %v3728_v57  ;;  %v3735_v38 = vld [vmem:[%s5074_s9 + $0x4e8] ss:$28 sps:$4 sm:$0xff]  }
 0x5a9   :  { %3353 = vmatprep.subr.bf16.mxu1 %v3729_v58  ;;  %v3778_v58 = vmov 1983009808  }
 0x5aa   :  { %2843 = vmatmul.mubr.bf16.vlgmr.msra.gmra.mxu1 %v4562_v46 }
 0x5ab   :  { %3334 = vmatpush3.bf16.msra.mxu0 %v3730_v59  ;;  %3354 = vmatpush3.bf16.msra.mxu1 %v3731_v60  ;;  %v2948_v59 = vunpack.c.l.s4 %v3778_v58 }
 0x5ac   :  { %2923 = vmatprep.mubr.bf16.mxu1 %v4553_v43  ;;  %3335 = vmatprep.subr.bf16.mxu0 %v3732_v61  ;;  %v3739_v43 = vld [vmem:[%s5074_s9 + $0x4b0] ss:$28 sps:$4 sm:$0xff]  }
 0x5ad   :  { %3355 = vmatprep.subr.bf16.mxu1 %v3733_v1  ;;  %v2949_v60 = vunpack.c.0.s8 %v2948_v59 }
 0x5af   :  { %3336 = vmatpush3.bf16.msra.mxu0 %v3734_v3  ;;  %3356 = vmatpush3.bf16.msra.mxu1 %v3735_v38  ;;  %v2952_v1 = vsub.s32 %v2949_v60, %v4076_v62 }
 0x5b0   :  { %3337 = vmatprep.subr.bf16.mxu0 %v3736_v4  ;;  %3357 = vmatprep.subr.bf16.mxu1 %v3737_v5 }
 0x5b3   :  { %3338 = vmatpush3.bf16.msra.mxu0 %v3738_v6  ;;  %3358 = vmatpush3.bf16.msra.mxu1 %v3739_v43 }
 0x5b4   :  { %3339 = vmatprep.subr.bf16.mxu0 %v3740_v7  ;;  %3359 = vmatprep.subr.bf16.mxu1 %v3741_v8 }
 0x5b7   :  { %3340 = vmatpush3.bf16.msra.mxu0 %v3742_v9  ;;  %3360 = vmatpush3.bf16.msra.mxu1 %v3743_v10 }
 0x5b8   :  { %3341 = vmatprep.subr.bf16.mxu0 %v3744_v11  ;;  %3361 = vmatprep.subr.bf16.mxu1 %v3745_v12 }
 0x5bb   :  { %3342 = vmatpush3.bf16.msra.mxu0 %v3746_v13  ;;  %3362 = vmatpush3.bf16.msra.mxu1 %v3747_v14  ;;  %v1440_v14 = vsub.s32 5, %v4076_v62 }
 0x5bc   :  { %3343 = vmatprep.subr.bf16.mxu0 %v3748_v15  ;;  %3363 = vmatprep.subr.bf16.mxu1 %v3749_v16  ;;  %v1436_v15 = vsub.s32 4, %v4076_v62 }
 0x5bd   :  { %v1441_v16 = vrot.slane %v5042_v25, %v1440_v14 }
 0x5bf   :  { %3344 = vmatpush3.bf16.msra.mxu0 %v3750_v17  ;;  %3364 = vmatpush3.bf16.msra.mxu1 %v3751_v26  ;;  %v1437_v17 = vrot.slane %v5042_v25, %v1436_v15 }
 0x5c0   :  { %3345 = vmatprep.subr.bf16.mxu0 %v3752_v18  ;;  %3365 = vmatprep.subr.bf16.mxu1 %v3753_v20  ;;  %v1444_v18 = vsub.s32 6, %v4076_v62 }
 0x5c3   :  { %3346 = vmatpush3.bf16.msra.mxu0 %v3754_v21  ;;  %3366 = vmatpush3.bf16.msra.mxu1 %v3755_v22 }
 0x5c4   :  { %3367 = vmatprep.subr.bf16.mxu1 %v3756_v23 }
 0x5c6   :  { %2884 = vmatmul.mubr.bf16.vlgmr.msra.gmra.mxu0 %v4546_v19 }
 0x5c7   :  { %3368 = vmatpush3.bf16.msra.mxu1 %v3757_v24 }
 0x5ca   :  { %2924 = vmatmul.mubr.bf16.vlgmr.msra.gmra.mxu1 %v4562_v46 }
 0x5e6   :  { %v2639_v31 = vpop.f32.mrf.mxu0 }
 0x5e7   :  { %v2640_v33 = vadd.f32 %v2639_v31, %v1421_v29  ;;  %v1445_v29 = vrot.slane %v5042_v25, %v1444_v18 }
 0x5e8   :  { %v2641_v32 = vpop.f32.mrf.mxu0 }
 0x5e9   :  { %v2642_v19 = vadd.f32 %v2641_v32, %v1425_v30 }
 0x5ea   :  { %v2643_v34 = vpop.f32.mrf.mxu0  ;;  %v2680_v2 = vpop.f32.mrf.mxu1 }
 0x5eb   :  { %v2681_v27 = vadd.f32 %v2680_v2, %v2640_v33 }
 0x5ec   :  { %v2644_v35 = vpop.f32.mrf.mxu0  ;;  %v2682_v46 = vpop.f32.mrf.mxu1 }
 0x5ed   :  { %v2683_v36 = vadd.f32 %v2682_v46, %v2642_v19  ;;  %3762 = vtanh.f32 %v2681_v27 }
 0x5ee   :  { %v2684_v37 = vpop.f32.mrf.mxu1 }
 0x5ef   :  { %3764 = vtanh.f32 %v2683_v36 }
 0x5f0   :  { %v2685_v39 = vpop.f32.mrf.mxu1 }
 0x5fa   :  { %v3763_v40 = vpop.eup %3762 }
 0x5fc   :  { %v3765_v41 = vpop.eup %3764 }
 0x5fd   :  { %v2945_v63 = vcombine.low %v3763_v40, %v3765_v41 }
 0x5ff   :  { %v2953_v4 = vrot.slane %v2945_v63, %v2952_v1 }
 0x626   :  { %v2721_v44 = vpop.f32.mrf.mxu0 }
 0x627   :  { %v2722_v48 = vadd.f32 %v2721_v44, %v1429_v42 }
 0x628   :  { %v2723_v47 = vpop.f32.mrf.mxu0 }
 0x629   :  { %v2724_v51 = vadd.f32 %v2723_v47, %v1433_v45 }
 0x62a   :  { %v2725_v49 = vpop.f32.mrf.mxu0  ;;  %v2762_v50 = vpop.f32.mrf.mxu1 }
 0x62b   :  { %v2763_v52 = vadd.f32 %v2762_v50, %v2722_v48 }
 0x62c   :  { %v2726_v53 = vpop.f32.mrf.mxu0  ;;  %v2764_v54 = vpop.f32.mrf.mxu1 }
 0x62d   :  { %v2765_v55 = vadd.f32 %v2764_v54, %v2724_v51  ;;  %3766 = vtanh.f32 %v2763_v52 }
 0x62e   :  { %v2766_v56 = vpop.f32.mrf.mxu1 }
 0x62f   :  { %3768 = vtanh.f32 %v2765_v55 }
 0x630   :  { %v2767_v57 = vpop.f32.mrf.mxu1 }
 0x63a   :  { %v3767_v61 = vpop.eup %3766 }
 0x63c   :  { %v3769_v3 = vpop.eup %3768 }
 0x63d   :  { %v2946_v38 = vcombine.low %v3767_v61, %v3769_v3 }
 0x63f   :  { %v2960_v5 = vrot.slane %v2946_v38, %v2952_v1 }
 0x641   :  { %v2961_v6 = vcombine.low %v2953_v4, %v2960_v5 }
 0x643   :  { %2980 = vst [vmem:[%s5077_s11] sm:$0xff] %v2961_v6 }
 0x666   :  { %v2803_v43 = vpop.f32.mrf.mxu0 }
 0x667   :  { %v2804_v21 = vadd.f32 %v2803_v43, %v1437_v17 }
 0x668   :  { %v2805_v7 = vpop.f32.mrf.mxu0 }
 0x669   :  { %v2806_v26 = vadd.f32 %v2805_v7, %v1441_v16 }
 0x66a   :  { %v2807_v8 = vpop.f32.mrf.mxu0  ;;  %v2844_v9 = vpop.f32.mrf.mxu1 }
 0x66b   :  { %v2845_v24 = vadd.f32 %v2844_v9, %v2804_v21 }
 0x66c   :  { %v2808_v10 = vpop.f32.mrf.mxu0  ;;  %v2846_v11 = vpop.f32.mrf.mxu1 }
 0x66d   :  { %v2847_v22 = vadd.f32 %v2846_v11, %v2806_v26 }
 0x66e   :  { %v2848_v12 = vpop.f32.mrf.mxu1 }
 0x66f   :  { %3770 = vtanh.f32 %v2847_v22 }
 0x670   :  { %v2849_v13 = vpop.f32.mrf.mxu1  ;;  %3772 = vtanh.f32 %v2845_v24 }
 0x67c   :  { %v3771_v62 = vpop.eup %3770 }
 0x67d   :  { %v3773_v36 = vpop.eup %3772 }
 0x67e   :  { %v2962_v37 = vcombine.low %v3773_v36, %v3771_v62 }
 0x680   :  { %v2969_v39 = vrot.slane %v2962_v37, %v2952_v1 }
 0x686   :  { %v3347_v20 = vpop.f32.mrf.mxu0 }
 0x688   :  { %v3348_v23 = vpop.f32.mrf.mxu0 }
 0x689   :  { %v3349_v31 = vadd.f32 %v3348_v23, %v3347_v20 }
 0x68a   :  { %v3350_v30 = vpop.f32.mrf.mxu0  ;;  %v3369_v32 = vpop.f32.mrf.mxu1 }
 0x68b   :  { %v2886_v2 = vadd.f32 %v3349_v31, %v1445_v29 }
 0x68c   :  { %v3351_v33 = vpop.f32.mrf.mxu0  ;;  %v3370_v34 = vpop.f32.mrf.mxu1 }
 0x68d   :  { %v3371_v19 = vadd.f32 %v3370_v34, %v3369_v32 }
 0x68e   :  { %v3372_v27 = vpop.f32.mrf.mxu1 }
 0x68f   :  { %v2926_v35 = vadd.f32 %v3371_v19, %v2886_v2 }
 0x690   :  { %v3373_v46 = vpop.f32.mrf.mxu1 }
 0x691   :  { %3774 = vtanh.f32 %v2926_v35 }
 0x69e   :  { %v3775_v25 = vpop.eup %3774 }
 0x69f   :  { %v2976_v40 = vrot.slane %v3775_v25, %v2952_v1 }
 0x6a1   :  { %v2977_v41 = vcombine.low %v2969_v39, %v2976_v40 }
 0x6a3   :  { %2985 = vst.msk [vmem:[%s5077_s11 + $0x8] sm:$0x3f] %vm2984_vm9, %v2977_v41 }

</bundles_post_ra>
